<compile_context>
chip_gen: v7x
topology: tpu7x:2x2x1
jax: 0.10.0
libtpu: 0.0.40
codegen_flags: <defaults>
</compile_context>

<pallas_src>
import functools

import jax
import jax.numpy as jnp
from jax.experimental import pallas as pl
from jax.experimental.pallas import tpu as pltpu

EPS = 1e-5  # nn.BatchNorm1d default


def _resblock_dense_kernel(x_ref, w1_ref, w2_ref, p_ref, o_ref,
                           h1_ref, h2_ref, stat_ref, *, inv_b):
    stage = pl.program_id(0)   # 0: fc1+relu+stats1, 1: bn1+fc2+stats2, 2: bn2+res+relu
    t = pl.program_id(1)       # batch tile

    p = p_ref[...]             # (5, F) f32 rows: b1, gamma1, beta1, gamma2, beta2
    b1, g1, be1, g2, be2 = (p[i:i + 1, :] for i in range(5))

    @pl.when(jnp.logical_and(stage == 0, t == 0))
    def _init():
        stat_ref[...] = jnp.zeros_like(stat_ref)

    def folded_bn(h, row, gamma, beta):
        # Training-mode BN with biased variance, affine folded into scale/shift
        # so the (tile, F) slab only sees one mul and one add (no f32 VPU FMA).
        mean = stat_ref[row:row + 1, :] * inv_b
        var = jnp.maximum(stat_ref[row + 1:row + 2, :] * inv_b - mean * mean, 0.0)
        scale = gamma * jax.lax.rsqrt(var + EPS)          # (1, F), rsqrt on EUP
        shift = beta - mean * scale
        return h * scale + shift

    @pl.when(stage == 0)
    def _stage0():
        x = x_ref[...]                                    # (tile, F) f32
        h = jnp.dot(x.astype(jnp.bfloat16), w1_ref[...],  # bf16 MXU, f32 accum
                    preferred_element_type=jnp.float32) + b1
        h = jnp.maximum(h, 0.0)
        h1_ref[t] = h
        stat_ref[0:1, :] += jnp.sum(h, axis=0, keepdims=True)
        stat_ref[1:2, :] += jnp.sum(h * h, axis=0, keepdims=True)

    @pl.when(stage == 1)
    def _stage1():
        hn = folded_bn(h1_ref[t], 0, g1, be1)
        # fc2 bias omitted: exactly cancelled by training-mode BN2 mean subtraction.
        h2 = jnp.dot(hn.astype(jnp.bfloat16), w2_ref[...],
                     preferred_element_type=jnp.float32)
        h2_ref[t] = h2
        stat_ref[2:3, :] += jnp.sum(h2, axis=0, keepdims=True)
        stat_ref[3:4, :] += jnp.sum(h2 * h2, axis=0, keepdims=True)

    @pl.when(stage == 2)
    def _stage2():
        hn = folded_bn(h2_ref[t], 2, g2, be2)
        o_ref[...] = jnp.maximum(hn + x_ref[...], 0.0)    # lane-dense unmasked store


def pack_params(params):
    """One-time parameter prep (hoisted out of the hot path).

    PyTorch Linear weight is (out, in); transpose so out_features lands on the
    matmul-result lane axis, cast weights to bf16 for the MXU, and pack the five
    per-feature vectors into a single (5, F) f32 slab.
    """
    w1, b1, g1, be1, w2, b2, g2, be2 = params
    del b2  # cancelled by training-mode BN2 (see kernel comment)
    w1t = jnp.transpose(w1).astype(jnp.bfloat16)          # (F_in, F_out)
    w2t = jnp.transpose(w2).astype(jnp.bfloat16)          # (F_out, F_out)
    pslab = jnp.stack([b1, g1, be1, g2, be2]).astype(jnp.float32)
    return w1t, w2t, pslab


def res_block_dense(x, packed_params, *, batch_tile=512):
    """x: (B, F) float32 with F a multiple of 128; packed_params from pack_params."""
    w1t, w2t, pslab = packed_params
    B, F = x.shape
    tile = min(batch_tile, B)
    assert B % tile == 0 and tile % 8 == 0 and F % 128 == 0, (B, tile, F)
    n_tiles = B // tile

    flops = 2 * 2 * B * F * F                             # two (B,F)x(F,F) matmuls
    bytes_accessed = 4 * B * F * 6 + 2 * F * F * 2 + 5 * F * 4
    vmem_bytes = (2 * B * F * 4                           # h1 + h2 scratch slabs
                  + 4 * tile * F * 4                      # x/out double buffers
                  + 2 * F * F * 2 + 8 * F * 4)            # weights + params/stats
    vmem_limit = max(32 * 1024 * 1024, int(vmem_bytes * 1.5))

    kernel = functools.partial(_resblock_dense_kernel, inv_b=1.0 / B)

    return pl.pallas_call(
        kernel,
        out_shape=jax.ShapeDtypeStruct((B, F), jnp.float32),
        grid_spec=pltpu.PrefetchScalarGridSpec(
            num_scalar_prefetch=0,
            grid=(3, n_tiles),
            in_specs=[
                pl.BlockSpec((tile, F), lambda s, t: (t, 0)),   # x tile
                pl.BlockSpec((F, F), lambda s, t: (0, 0)),      # w1 (resident)
                pl.BlockSpec((F, F), lambda s, t: (0, 0)),      # w2 (resident)
                pl.BlockSpec((5, F), lambda s, t: (0, 0)),      # param slab
            ],
            out_specs=pl.BlockSpec((tile, F), lambda s, t: (t, 0)),
            scratch_shapes=[
                pltpu.VMEM((n_tiles, tile, F), jnp.float32),    # h1 (pre-BN1)
                pltpu.VMEM((n_tiles, tile, F), jnp.float32),    # h2 (pre-BN2)
                pltpu.VMEM((4, F), jnp.float32),                # sum/sumsq x2
            ]),
        compiler_params=pltpu.CompilerParams(
            dimension_semantics=("arbitrary", "arbitrary"),
            vmem_limit_bytes=vmem_limit),
        cost_estimate=pl.CostEstimate(
            flops=flops, transcendentals=2 * F * n_tiles,
            bytes_accessed=bytes_accessed),
    )(x.astype(jnp.float32), w1t, w2t, pslab)


def ref_forward(x, params):
    """Pure-JAX f32 reference matching the PyTorch forward (training-mode BN)."""
    w1, b1, g1, be1, w2, b2, g2, be2 = params
    hp = jax.lax.Precision.HIGHEST

    def bn(h, g, be):
        m = jnp.mean(h, axis=0, keepdims=True)
        v = jnp.mean((h - m) ** 2, axis=0, keepdims=True)
        return (h - m) * jax.lax.rsqrt(v + EPS) * g + be

    h = jnp.dot(x, w1.T, precision=hp) + b1
    h = jnp.maximum(h, 0.0)
    h = bn(h, g1, be1)
    h = jnp.dot(h, w2.T, precision=hp) + b2   # reference keeps b2
    h = bn(h, g2, be2)
    return jnp.maximum(h + x, 0.0)


if __name__ == "__main__":
    # Residual add requires in_features == out_features.
    # F=128 keeps everything lane-dense; B=256 with batch_tile=128 exercises the
    # multi-tile grid and the cross-tile BN partial-sum accumulation while staying small.
    B, F = 256, 128

    key = jax.random.PRNGKey(0)
    ks = jax.random.split(key, 9)

    x = jax.random.normal(ks[0], (B, F), jnp.float32)
    w1 = 0.05 * jax.random.normal(ks[1], (F, F), jnp.float32)   # (out, in)
    b1 = 0.10 * jax.random.normal(ks[2], (F,), jnp.float32)
    w2 = 0.05 * jax.random.normal(ks[3], (F, F), jnp.float32)
    b2 = 0.10 * jax.random.normal(ks[4], (F,), jnp.float32)
    g1 = 1.0 + 0.1 * jax.random.normal(ks[5], (F,), jnp.float32)
    be1 = 0.10 * jax.random.normal(ks[6], (F,), jnp.float32)
    g2 = 1.0 + 0.1 * jax.random.normal(ks[7], (F,), jnp.float32)
    be2 = 0.10 * jax.random.normal(ks[8], (F,), jnp.float32)

    params = (w1, b1, g1, be1, w2, b2, g2, be2)
    packed = pack_params(params)          # one-time prep, out of the hot path

    out = jax.block_until_ready(res_block_dense(x, packed, batch_tile=128))
    ref = jax.block_until_ready(ref_forward(x, params))

    assert out.shape == (B, F)
    err = float(jnp.max(jnp.abs(out - ref)))
    # bf16 MXU operands (f32 accumulation + f32 BN math) -> a few 1e-3 of error.
    assert jnp.allclose(out, ref, atol=4e-2, rtol=4e-2), f"max abs diff {err}"

    print("KERNEL_OK")
</pallas_src>

<mosaic_0001>
module attributes {stable_mosaic.version = 11 : i64} {
  func.func @_resblock_dense_kernel(%arg0: i32, %arg1: i32, %arg2: memref<128x128xf32, #tpu.memory_space<vmem>>, %arg3: memref<128x128xbf16, #tpu.memory_space<vmem>>, %arg4: memref<128x128xbf16, #tpu.memory_space<vmem>>, %arg5: memref<5x128xf32, #tpu.memory_space<vmem>>, %arg6: memref<128x128xf32, #tpu.memory_space<vmem>>, %arg7: memref<2x128x128xf32, #tpu.memory_space<vmem>>, %arg8: memref<2x128x128xf32, #tpu.memory_space<vmem>>, %arg9: memref<4x128xf32, #tpu.memory_space<vmem>>) attributes {dimension_semantics = [#tpu.dimension_semantics<arbitrary>, #tpu.dimension_semantics<arbitrary>], iteration_bounds = array<i64: 3, 2>, scalar_prefetch = 0 : i64, scratch_operands = 3 : i64, tpu.core_type = #tpu.core_type<tc>, window_params = [{transform_indices = @transform_0, window_bounds = array<i64: 128, 128>}, {pipeline_mode = #tpu.pipeline_mode<synchronous>, transform_indices = @transform_1, window_bounds = array<i64: 128, 128>}, {pipeline_mode = #tpu.pipeline_mode<synchronous>, transform_indices = @transform_2, window_bounds = array<i64: 128, 128>}, {pipeline_mode = #tpu.pipeline_mode<synchronous>, transform_indices = @transform_3, window_bounds = array<i64: 5, 128>}, {transform_indices = @transform_4, window_bounds = array<i64: 128, 128>}]} {
    %c0 = arith.constant 0 : index
    %c0_0 = arith.constant 0 : index
    %0 = vector.load %arg5[%c0, %c0_0] : memref<5x128xf32, #tpu.memory_space<vmem>>, vector<5x128xf32>
    %1 = vector.extract_strided_slice %0 {offsets = [0, 0], sizes = [1, 128], strides = [1, 1]} : vector<5x128xf32> to vector<1x128xf32>
    %2 = vector.extract_strided_slice %0 {offsets = [1, 0], sizes = [1, 128], strides = [1, 1]} : vector<5x128xf32> to vector<1x128xf32>
    %3 = vector.extract_strided_slice %0 {offsets = [2, 0], sizes = [1, 128], strides = [1, 1]} : vector<5x128xf32> to vector<1x128xf32>
    %4 = vector.extract_strided_slice %0 {offsets = [3, 0], sizes = [1, 128], strides = [1, 1]} : vector<5x128xf32> to vector<1x128xf32>
    %5 = vector.extract_strided_slice %0 {offsets = [4, 0], sizes = [1, 128], strides = [1, 1]} : vector<5x128xf32> to vector<1x128xf32>
    %c0_i32 = arith.constant 0 : i32
    %6 = arith.cmpi eq, %arg0, %c0_i32 : i32
    %c0_i32_1 = arith.constant 0 : i32
    %7 = arith.cmpi eq, %arg1, %c0_i32_1 : i32
    %8 = arith.andi %6, %7 : i1
    %9 = arith.extui %8 : i1 to i32
    %c0_i32_2 = arith.constant 0 : i32
    %10 = arith.cmpi ne, %9, %c0_i32_2 : i32
    scf.if %10 {
      %cst = arith.constant 0.000000e+00 : f32
      %20 = vector.broadcast %cst : f32 to vector<4x128xf32>
      %c0_7 = arith.constant 0 : index
      %c0_8 = arith.constant 0 : index
      %21 = vector.load %arg9[%c0_7, %c0_8] : memref<4x128xf32, #tpu.memory_space<vmem>>, vector<4x128xf32>
      tpu.vector_store %arg9[%c0_7, %c0_8], %20 {strides = array<i32>} : memref<4x128xf32, #tpu.memory_space<vmem>>, vector<4x128xf32>,
    } else {
    }
    %c0_i32_3 = arith.constant 0 : i32
    %11 = arith.cmpi eq, %arg0, %c0_i32_3 : i32
    %12 = arith.extui %11 : i1 to i32
    %c0_i32_4 = arith.constant 0 : i32
    %13 = arith.cmpi ne, %12, %c0_i32_4 : i32
    scf.if %13 {
      %c0_7 = arith.constant 0 : index
      %c0_8 = arith.constant 0 : index
      %20 = vector.load %arg2[%c0_7, %c0_8] : memref<128x128xf32, #tpu.memory_space<vmem>>, vector<128x128xf32>
      %21 = arith.truncf %20 : vector<128x128xf32> to vector<128x128xbf16>
      %c0_9 = arith.constant 0 : index
      %c0_10 = arith.constant 0 : index
      %22 = vector.load %arg3[%c0_9, %c0_10] : memref<128x128xbf16, #tpu.memory_space<vmem>>, vector<128x128xbf16>
      %cst = arith.constant dense<0.000000e+00> : vector<128x128xf32>
      %23 = tpu.matmul %21, %22, %cst {dimension_numbers = #tpu.dot_dimension_numbers<[1], [0], [0], [1], [0, 0, 1, 1], [], []>} : vector<128x128xbf16>, vector<128x128xbf16>, vector<128x128xf32> -> vector<128x128xf32>
      %24 = vector.broadcast %1 : vector<1x128xf32> to vector<128x128xf32>
      %25 = arith.addf %23, %24 : vector<128x128xf32>
      %cst_11 = arith.constant 0.000000e+00 : f32
      %26 = vector.broadcast %cst_11 : f32 to vector<128x128xf32>
      %27 = arith.maximumf %25, %26 : vector<128x128xf32>
      %28 = arith.index_cast %arg1 : i32 to index
      %c0_12 = arith.constant 0 : index
      %c0_13 = arith.constant 0 : index
      %29 = vector.load %arg7[%28, %c0_12, %c0_13] : memref<2x128x128xf32, #tpu.memory_space<vmem>>, vector<1x128x128xf32>
      %30 = vector.shape_cast %29 : vector<1x128x128xf32> to vector<128x128xf32>
      %31 = vector.shape_cast %27 : vector<128x128xf32> to vector<1x128x128xf32>
      tpu.vector_store %arg7[%28, %c0_12, %c0_13], %31 {strides = array<i32>} : memref<2x128x128xf32, #tpu.memory_space<vmem>>, vector<1x128x128xf32>,
      %c0_14 = arith.constant 0 : index
      %c0_15 = arith.constant 0 : index
      %32 = vector.load %arg9[%c0_14, %c0_15] : memref<4x128xf32, #tpu.memory_space<vmem>>, vector<1x128xf32>
      %cst_16 = arith.constant dense<0.000000e+00> : vector<128xf32>
      %33 = vector.multi_reduction <add>, %27, %cst_16 [0] : vector<128x128xf32> to vector<128xf32>
      %34 = vector.shape_cast %33 : vector<128xf32> to vector<1x128xf32>
      %35 = arith.addf %32, %34 : vector<1x128xf32>
      %c0_17 = arith.constant 0 : index
      %c0_18 = arith.constant 0 : index
      %36 = vector.load %arg9[%c0_17, %c0_18] : memref<4x128xf32, #tpu.memory_space<vmem>>, vector<1x128xf32>
      tpu.vector_store %arg9[%c0_17, %c0_18], %35 {strides = array<i32>} : memref<4x128xf32, #tpu.memory_space<vmem>>, vector<1x128xf32>,
      %c1 = arith.constant 1 : index
      %c0_19 = arith.constant 0 : index
      %37 = vector.load %arg9[%c1, %c0_19] : memref<4x128xf32, #tpu.memory_space<vmem>>, vector<1x128xf32>
      %38 = arith.mulf %27, %27 : vector<128x128xf32>
      %cst_20 = arith.constant dense<0.000000e+00> : vector<128xf32>
      %39 = vector.multi_reduction <add>, %38, %cst_20 [0] : vector<128x128xf32> to vector<128xf32>
      %40 = vector.shape_cast %39 : vector<128xf32> to vector<1x128xf32>
      %41 = arith.addf %37, %40 : vector<1x128xf32>
      %c1_21 = arith.constant 1 : index
      %c0_22 = arith.constant 0 : index
      %42 = vector.load %arg9[%c1_21, %c0_22] : memref<4x128xf32, #tpu.memory_space<vmem>>, vector<1x128xf32>
      tpu.vector_store %arg9[%c1_21, %c0_22], %41 {strides = array<i32>} : memref<4x128xf32, #tpu.memory_space<vmem>>, vector<1x128xf32>,
    } else {
    }
    %c1_i32 = arith.constant 1 : i32
    %14 = arith.cmpi eq, %arg0, %c1_i32 : i32
    %15 = arith.extui %14 : i1 to i32
    %c0_i32_5 = arith.constant 0 : i32
    %16 = arith.cmpi ne, %15, %c0_i32_5 : i32
    scf.if %16 {
      %20 = arith.index_cast %arg1 : i32 to index
      %c0_7 = arith.constant 0 : index
      %c0_8 = arith.constant 0 : index
      %21 = vector.load %arg7[%20, %c0_7, %c0_8] : memref<2x128x128xf32, #tpu.memory_space<vmem>>, vector<1x128x128xf32>
      %22 = vector.shape_cast %21 : vector<1x128x128xf32> to vector<128x128xf32>
      %c0_9 = arith.constant 0 : index
      %c0_10 = arith.constant 0 : index
      %23 = vector.load %arg9[%c0_9, %c0_10] : memref<4x128xf32, #tpu.memory_space<vmem>>, vector<1x128xf32>
      %cst = arith.constant 3.906250e-03 : f32
      %24 = vector.broadcast %cst : f32 to vector<1x128xf32>
      %25 = arith.mulf %23, %24 : vector<1x128xf32>
      %c1 = arith.constant 1 : index
      %c0_11 = arith.constant 0 : index
      %26 = vector.load %arg9[%c1, %c0_11] : memref<4x128xf32, #tpu.memory_space<vmem>>, vector<1x128xf32>
      %cst_12 = arith.constant 3.906250e-03 : f32
      %27 = vector.broadcast %cst_12 : f32 to vector<1x128xf32>
      %28 = arith.mulf %26, %27 : vector<1x128xf32>
      %29 = arith.mulf %25, %25 : vector<1x128xf32>
      %30 = arith.subf %28, %29 : vector<1x128xf32>
      %cst_13 = arith.constant 0.000000e+00 : f32
      %31 = vector.broadcast %cst_13 : f32 to vector<1x128xf32>
      %32 = arith.maximumf %30, %31 : vector<1x128xf32>
      %cst_14 = arith.constant 9.99999974E-6 : f32
      %33 = vector.broadcast %cst_14 : f32 to vector<1x128xf32>
      %34 = arith.addf %32, %33 : vector<1x128xf32>
      %35 = math.rsqrt %34 : vector<1x128xf32>
      %36 = arith.mulf %2, %35 : vector<1x128xf32>
      %37 = arith.mulf %25, %36 : vector<1x128xf32>
      %38 = arith.subf %3, %37 : vector<1x128xf32>
      %39 = vector.broadcast %36 : vector<1x128xf32> to vector<128x128xf32>
      %40 = arith.mulf %22, %39 : vector<128x128xf32>
      %41 = vector.broadcast %38 : vector<1x128xf32> to vector<128x128xf32>
      %42 = arith.addf %40, %41 : vector<128x128xf32>
      %43 = arith.truncf %42 : vector<128x128xf32> to vector<128x128xbf16>
      %c0_15 = arith.constant 0 : index
      %c0_16 = arith.constant 0 : index
      %44 = vector.load %arg4[%c0_15, %c0_16] : memref<128x128xbf16, #tpu.memory_space<vmem>>, vector<128x128xbf16>
      %cst_17 = arith.constant dense<0.000000e+00> : vector<128x128xf32>
      %45 = tpu.matmul %43, %44, %cst_17 {dimension_numbers = #tpu.dot_dimension_numbers<[1], [0], [0], [1], [0, 0, 1, 1], [], []>} : vector<128x128xbf16>, vector<128x128xbf16>, vector<128x128xf32> -> vector<128x128xf32>
      %46 = arith.index_cast %arg1 : i32 to index
      %c0_18 = arith.constant 0 : index
      %c0_19 = arith.constant 0 : index
      %47 = vector.load %arg8[%46, %c0_18, %c0_19] : memref<2x128x128xf32, #tpu.memory_space<vmem>>, vector<1x128x128xf32>
      %48 = vector.shape_cast %47 : vector<1x128x128xf32> to vector<128x128xf32>
      %49 = vector.shape_cast %45 : vector<128x128xf32> to vector<1x128x128xf32>
      tpu.vector_store %arg8[%46, %c0_18, %c0_19], %49 {strides = array<i32>} : memref<2x128x128xf32, #tpu.memory_space<vmem>>, vector<1x128x128xf32>,
      %c2 = arith.constant 2 : index
      %c0_20 = arith.constant 0 : index
      %50 = vector.load %arg9[%c2, %c0_20] : memref<4x128xf32, #tpu.memory_space<vmem>>, vector<1x128xf32>
      %cst_21 = arith.constant dense<0.000000e+00> : vector<128xf32>
      %51 = vector.multi_reduction <add>, %45, %cst_21 [0] : vector<128x128xf32> to vector<128xf32>
      %52 = vector.shape_cast %51 : vector<128xf32> to vector<1x128xf32>
      %53 = arith.addf %50, %52 : vector<1x128xf32>
      %c2_22 = arith.constant 2 : index
      %c0_23 = arith.constant 0 : index
      %54 = vector.load %arg9[%c2_22, %c0_23] : memref<4x128xf32, #tpu.memory_space<vmem>>, vector<1x128xf32>
      tpu.vector_store %arg9[%c2_22, %c0_23], %53 {strides = array<i32>} : memref<4x128xf32, #tpu.memory_space<vmem>>, vector<1x128xf32>,
      %c3 = arith.constant 3 : index
      %c0_24 = arith.constant 0 : index
      %55 = vector.load %arg9[%c3, %c0_24] : memref<4x128xf32, #tpu.memory_space<vmem>>, vector<1x128xf32>
      %56 = arith.mulf %45, %45 : vector<128x128xf32>
      %cst_25 = arith.constant dense<0.000000e+00> : vector<128xf32>
      %57 = vector.multi_reduction <add>, %56, %cst_25 [0] : vector<128x128xf32> to vector<128xf32>
      %58 = vector.shape_cast %57 : vector<128xf32> to vector<1x128xf32>
      %59 = arith.addf %55, %58 : vector<1x128xf32>
      %c3_26 = arith.constant 3 : index
      %c0_27 = arith.constant 0 : index
      %60 = vector.load %arg9[%c3_26, %c0_27] : memref<4x128xf32, #tpu.memory_space<vmem>>, vector<1x128xf32>
      tpu.vector_store %arg9[%c3_26, %c0_27], %59 {strides = array<i32>} : memref<4x128xf32, #tpu.memory_space<vmem>>, vector<1x128xf32>,
    } else {
    }
    %c2_i32 = arith.constant 2 : i32
    %17 = arith.cmpi eq, %arg0, %c2_i32 : i32
    %18 = arith.extui %17 : i1 to i32
    %c0_i32_6 = arith.constant 0 : i32
    %19 = arith.cmpi ne, %18, %c0_i32_6 : i32
    scf.if %19 {
      %20 = arith.index_cast %arg1 : i32 to index
      %c0_7 = arith.constant 0 : index
      %c0_8 = arith.constant 0 : index
      %21 = vector.load %arg8[%20, %c0_7, %c0_8] : memref<2x128x128xf32, #tpu.memory_space<vmem>>, vector<1x128x128xf32>
      %22 = vector.shape_cast %21 : vector<1x128x128xf32> to vector<128x128xf32>
      %c2 = arith.constant 2 : index
      %c0_9 = arith.constant 0 : index
      %23 = vector.load %arg9[%c2, %c0_9] : memref<4x128xf32, #tpu.memory_space<vmem>>, vector<1x128xf32>
      %cst = arith.constant 3.906250e-03 : f32
      %24 = vector.broadcast %cst : f32 to vector<1x128xf32>
      %25 = arith.mulf %23, %24 : vector<1x128xf32>
      %c3 = arith.constant 3 : index
      %c0_10 = arith.constant 0 : index
      %26 = vector.load %arg9[%c3, %c0_10] : memref<4x128xf32, #tpu.memory_space<vmem>>, vector<1x128xf32>
      %cst_11 = arith.constant 3.906250e-03 : f32
      %27 = vector.broadcast %cst_11 : f32 to vector<1x128xf32>
      %28 = arith.mulf %26, %27 : vector<1x128xf32>
      %29 = arith.mulf %25, %25 : vector<1x128xf32>
      %30 = arith.subf %28, %29 : vector<1x128xf32>
      %cst_12 = arith.constant 0.000000e+00 : f32
      %31 = vector.broadcast %cst_12 : f32 to vector<1x128xf32>
      %32 = arith.maximumf %30, %31 : vector<1x128xf32>
      %cst_13 = arith.constant 9.99999974E-6 : f32
      %33 = vector.broadcast %cst_13 : f32 to vector<1x128xf32>
      %34 = arith.addf %32, %33 : vector<1x128xf32>
      %35 = math.rsqrt %34 : vector<1x128xf32>
      %36 = arith.mulf %4, %35 : vector<1x128xf32>
      %37 = arith.mulf %25, %36 : vector<1x128xf32>
      %38 = arith.subf %5, %37 : vector<1x128xf32>
      %39 = vector.broadcast %36 : vector<1x128xf32> to vector<128x128xf32>
      %40 = arith.mulf %22, %39 : vector<128x128xf32>
      %41 = vector.broadcast %38 : vector<1x128xf32> to vector<128x128xf32>
      %42 = arith.addf %40, %41 : vector<128x128xf32>
      %c0_14 = arith.constant 0 : index
      %c0_15 = arith.constant 0 : index
      %43 = vector.load %arg2[%c0_14, %c0_15] : memref<128x128xf32, #tpu.memory_space<vmem>>, vector<128x128xf32>
      %44 = arith.addf %42, %43 : vector<128x128xf32>
      %cst_16 = arith.constant 0.000000e+00 : f32
      %45 = vector.broadcast %cst_16 : f32 to vector<128x128xf32>
      %46 = arith.maximumf %44, %45 : vector<128x128xf32>
      %c0_17 = arith.constant 0 : index
      %c0_18 = arith.constant 0 : index
      %47 = vector.load %arg6[%c0_17, %c0_18] : memref<128x128xf32, #tpu.memory_space<vmem>>, vector<128x128xf32>
      tpu.vector_store %arg6[%c0_17, %c0_18], %46 {strides = array<i32>} : memref<128x128xf32, #tpu.memory_space<vmem>>, vector<128x128xf32>,
    } else {
    }
    return
  }
  func.func @transform_0(%arg0: i32, %arg1: i32) -> (i32, i32) {
    %c0_i32 = arith.constant 0 : i32
    %c0_i32_0 = arith.constant 0 : i32
    return %arg1, %c0_i32 : i32, i32
  }
  func.func @transform_1(%arg0: i32, %arg1: i32) -> (i32, i32) {
    %c0_i32 = arith.constant 0 : i32
    %c0_i32_0 = arith.constant 0 : i32
    %c0_i32_1 = arith.constant 0 : i32
    return %c0_i32, %c0_i32_0 : i32, i32
  }
  func.func @transform_2(%arg0: i32, %arg1: i32) -> (i32, i32) {
    %c0_i32 = arith.constant 0 : i32
    %c0_i32_0 = arith.constant 0 : i32
    %c0_i32_1 = arith.constant 0 : i32
    return %c0_i32, %c0_i32_0 : i32, i32
  }
  func.func @transform_3(%arg0: i32, %arg1: i32) -> (i32, i32) {
    %c0_i32 = arith.constant 0 : i32
    %c0_i32_0 = arith.constant 0 : i32
    %c0_i32_1 = arith.constant 0 : i32
    return %c0_i32, %c0_i32_0 : i32, i32
  }
  func.func @transform_4(%arg0: i32, %arg1: i32) -> (i32, i32) {
    %c0_i32 = arith.constant 0 : i32
    %c0_i32_0 = arith.constant 0 : i32
    return %arg1, %c0_i32 : i32, i32
  }
}

</mosaic_0001>

<bundles_post_ra>
// kernel: tpu_custom_call.1
= control target key start
LH: loop header
LB: loop body
LE: loop exit
PB: predicated region body
PF: predicated region fallthrough
CT: control target
= control target key end

     0   :  { %9 = vsyncpa [#allocation6], 0  ;;  %s2139_s0 = inlined_call_operand.hbm [shape: f32[256,128], index: 0, kind: input, shape index: {}]   ;;  %s2140_s1 = inlined_call_operand.hbm [shape: bf16[128,128], index: 1, kind: input, shape index: {}]   ;;  %s2141_s2 = inlined_call_operand.hbm [shape: bf16[128,128], index: 2, kind: input, shape index: {}]   ;;  %s2142_s3 = inlined_call_operand.vmem [shape: f32[5,128], index: 3, kind: input, shape index: {}]   ;;  %s2143_s4 = inlined_call_operand.hbm [shape: f32[256,128], index: 4, kind: output, shape index: {}]  }
   0x1   :  { %11 = vsyncpa [#allocation6 + $0x1], 0 }
   0x2   :  { %12 = vsyncpa [#allocation9], 0 }
   0x3   :  { %13 = vsyncpa [#allocation7], 0 }
   0x4   :  { %15 = vsyncpa [#allocation7 + $0x1], 0  ;;  %s1686_s15 = smov 0   ;;  %s1688_s16 = smov 0  }
   0x5   :  { %s1690_s17 = smov 0   ;;  %s1692_s18 = smov 0  }
   0x6   :  { %s1694_s19 = smov 0   ;;  %s1696_s20 = smov 0  }
   0x7   :  { %s1698_s21 = smov 0   ;;  %s1700_s22 = smov 0  }
   0x8 LB: > { %s1163_s23 = sadd.s32 4294967295, %s1648_s22   ;;  %s1164_s24 = sadd.s32 4294967294, %s1648_s22   ;;  %s1648_s22 = sphi %s1700_s22, %s21_s22   ;;  %s1644_s21 = sphi %s1698_s21, %s2171_s21   ;;  %s1640_s20 = sphi %s1696_s20, %s2170_s20   ;;  %s1636_s19 = sphi %s1694_s19, %s2169_s19   ;;  %s1632_s18 = sphi %s1692_s18, %s2168_s18   ;;  %s1628_s17 = sphi %s1690_s17, %s2167_s17   ;;  %s1624_s16 = sphi %s1688_s16, %s2166_s16   ;;  %s1620_s15 = sphi %s1686_s15, %s2165_s15  }
   0x9   : > { %p53_p0 = scmp.ne.s32.totalorder %s1624_s16, %s1620_s15  ;;  %p1730_p1 = scmp.eq.s32.totalorder %s1163_s23, 0 }
   0xa   : > { %p1734_p2 = scmp.eq.s32.totalorder %s1163_s23, 5  ;;  %p146_p3 = scmp.eq.s32.totalorder %s1164_s24, 5 }
   0xb   : > { %s2149_s25 = scalar_select %p1730_p1, 1, 0 }
   0xc   : > { %s2150_s26 = scalar_select %p1734_p2, 1, 0 }
   0xd   : > { %p1740_p4 = por %p1730_p1, %p53_p0  ;;  %p1165_p5 = scmp.ge.s32.totalorder %s1648_s22, 1 }
   0xe   : > { %p1745_p6 = por %p146_p3, %p53_p0  ;;  %p153_p7 = scmp.lt.s32.totalorder %s1648_s22, 7 }
   0xf   : > { %s2151_s27 = scalar_select %p1740_p4, 1, 0 }
  0x10   : > { %s2152_s28 = scalar_select %p1745_p6, 1, 0 }
  0x11   : > { %p1750_p8 = pnand %p1165_p5, %p153_p7  ;;  %s1650_s30 = smov [#allocation8]  }
  0x12   : > { %2153 = sst [smem:[#allocation15_spill]] %s2152_s28  ;;  %s165_s5 = sshll.u32 %s1650_s30, 4  ;;  %s166_s5 = int_to_ptr.vmem [resolvable:$true] %s165_s5 }
  0x13   : > { %s2154_s29 = scalar_select %p1750_p8, 1, 0 }
  0x14   : > { %p1346_p9 = pneg %p1750_p8  ;;  %s1651_s7 = smov [#allocation10]  }
  0x15   : > { %s178_s8 = sshll.u32 %s1651_s7, 4  ;;  %s1460_s11 = scalar_lea.hbm %s2140_s1, 1024  ;;  %s1762_s8 = int_to_ptr.vmem [resolvable:$true] %s178_s8 }
  0x16   : > { %p1758_p10 = pnand %p1346_p9, %p1730_p1  ;;  %p1461_p11 = scmp.ne.s32.totalorder %s2140_s1, %s1460_s11 }
  0x17   : > { %p1467_p3 = scmp.lt.u32.totalorder %s1460_s11, %s2140_s1 }
  0x18   : > { %p1462_p12 = pneg %p1758_p10 }
  0x1a   : > { %p1463_p13 = pnand %p1462_p12, %p1461_p11 }
  0x1c   : > { %p1464_p0 = pneg %p1463_p13 }
  0x1e   : > { %p1469_p5 = pnand %p1467_p3, %p1464_p0 }
  0x20   : > { %1472 = shalt.err (!%p1469_p5)
}
  0x21   : > { %s1473_s24 = scalar_lea.vmem %s166_s5, 1024  ;;  %p1481_p1 = scmp.lt.s32.totalorder %s166_s5, %s166_s5 }
  0x22   : > { %p1474_p7 = scmp.ne.s32.totalorder %s166_s5, %s1473_s24  ;;  %p1482_p4 = scmp.lt.s32.totalorder %s1473_s24, %s1473_s24 }
  0x24   : > { %p1476_p9 = pnand %p1474_p7, %p1462_p12  ;;  %p1483_p8 = por %p1482_p4, %p1481_p1 }
  0x26   : > { %p1477_p6 = pneg %p1476_p9 }
  0x28   : > { %p1484_p2 = pnand %p1483_p8, %p1477_p6 }
  0x2a   : > { %1487 = shalt.err (!%p1484_p2)
}
  0x2b   : > { %s1652_s30 = smov 64   ;;  %s1653_s7 = smov 4  }
  0x2c   : > { %1349 = dma.hbm_to_vmem [thread:$0]  (!%p1758_p10), %s2140_s1, 1024, %s166_s5, [#allocation9], %s1652_s30, %s1652_s30, %s1653_s7  }
  0x2d   : > { %s1488_s13 = scalar_lea.hbm %s2141_s2, 1024 }
  0x2e   : > { %p1489_p11 = scmp.ne.s32.totalorder %s2141_s2, %s1488_s13  ;;  %p1495_p4 = scmp.lt.u32.totalorder %s1488_s13, %s2141_s2 }
  0x30   : > { %p1491_p1 = pnand %p1489_p11, %p1462_p12 }
  0x32   : > { %p1492_p2 = pneg %p1491_p1 }
  0x34   : > { %p1497_p6 = pnand %p1495_p4, %p1492_p2 }
  0x36   : > { %1500 = shalt.err (!%p1497_p6)
}
  0x37   : > { %s1501_s5 = scalar_lea.vmem %s1762_s8, 1024  ;;  %p1509_p3 = scmp.lt.s32.totalorder %s1762_s8, %s1762_s8 }
  0x38   : > { %p1502_p8 = scmp.ne.s32.totalorder %s1762_s8, %s1501_s5  ;;  %p1510_p5 = scmp.lt.s32.totalorder %s1501_s5, %s1501_s5 }
  0x3a   : > { %p1504_p13 = pnand %p1502_p8, %p1462_p12  ;;  %p1511_p7 = por %p1510_p5, %p1509_p3 }
  0x3c   : > { %p1505_p0 = pneg %p1504_p13 }
  0x3e   : > { %p1512_p9 = pnand %p1511_p7, %p1505_p0 }
  0x40   : > { %1515 = shalt.err (!%p1512_p9)
}
  0x41   : > { %1352 = dma.hbm_to_vmem [thread:$0]  (!%p1758_p10), %s2141_s2, 1024, %s1762_s8, [#allocation9], %s1652_s30, %s1652_s30, %s1653_s7  }
  0x42   : > { %s30_s10 = sadd.s32 1, %s1640_s20  ;;  %s33_s11 = sadd.s32 1, %s1644_s21 }
  0x43   : > { %p31_p12 = scmp.ge.s32.totalorder %s30_s10, 2  ;;  %s40_s6 = sadd.s32 1, %s1628_s17 }
  0x44   : > { %p47_p11 = scmp.ne.s32.totalorder %s1628_s17, %s1624_s16  ;;  %p48_p1 = scmp.eq.s32.totalorder %s1648_s22, 0 }
  0x45   : > { %s2173_s10 = smov (%p31_p12, %s30_s10), 0  ;;  %s2175_s11 = smov (!%p31_p12, %s33_s11), %s1644_s21 }
  0x46   : > { %s37_s12 = ssub.s32 %s1640_s20, %s2173_s10  ;;  %p1822_p2 = por %p48_p1, %p47_p11 }
  0x47   : > { %p35_p10 = scmp.ge.s32.totalorder %s2175_s11, 3  ;;  %p38_p4 = scmp.eq.s32.totalorder %s37_s12, 0 }
  0x48   : > { %p2157_p6 = scmp.ne.s32.totalorder %s2150_s26, 0  ;;  %p1363_p13 = scmp.lt.s32.totalorder %s1648_s22, 6 }
  0x49   : > { %s2177_s11 = smov (%p35_p10, %s2175_s11), 0  ;;  %s195_s7 = sand.u32 1, %s1628_s17  }
  0x4a   : > { %p1828_p8 = por %p2157_p6, %p47_p11  ;;  %s1204_s14 = sshll.u32 %s1640_s20, 11 }
  0x4b   : > { %s1836_s30 = scalar_select %p38_p4, %s1628_s17, %s40_s6  }
  0x4c   : > { %s1169_s23 = sshll.u32 %s195_s7, 7  ;;  %s1843_s28 = scalar_lea.hbm %s2139_s0, %s1204_s14 }
  0x4d   : > { %s199_s26 = scalar_lea.vmem [#allocation5], %s1169_s23  ;;  %p1847_p0 = pnand %p1363_p13, %p1822_p2 }
  0x4e   : > { %s206_s9 = sshll.u32 %s199_s26, 4  ;;  %s1853_s6 = scalar_lea.sflag [#allocation6], %s195_s7  ;;  %s1851_s9 = int_to_ptr.vmem [resolvable:$true] %s206_s9 }
  0x4f   : > { %s1516_s24 = scalar_lea.hbm %s1843_s28, 2048  ;;  %p1518_p5 = pneg %p1847_p0 }
  0x50   : > { %p1517_p3 = scmp.ne.s32.totalorder %s1843_s28, %s1516_s24  ;;  %s1521_s23 = scalar_lea.hbm %s2139_s0, 4096 }
  0x51   : > { %p1522_p12 = scmp.lt.u32.totalorder %s1843_s28, %s2139_s0  ;;  %p1523_p11 = scmp.lt.u32.totalorder %s1521_s23, %s1516_s24 }
  0x52   : > { %p1519_p7 = pnand %p1518_p5, %p1517_p3  ;;  %p1525_p2 = scmp.lt.u32.totalorder %s1516_s24, %s1843_s28 }
  0x53   : > { %p1524_p1 = por %p1523_p11, %p1522_p12 }
  0x54   : > { %p1520_p9 = pneg %p1519_p7 }
  0x55   : > { %p1526_p10 = por %p1525_p2, %p1524_p1 }
  0x57   : > { %p1527_p4 = pnand %p1526_p10, %p1520_p9 }
  0x59   : > { %1530 = shalt.err (!%p1527_p4)
}
  0x5a   : > { %s1531_s7 = scalar_lea.vmem %s1851_s9, 2048  ;;  %s1654_s14 = smov [#allocation5]  }
  0x5b   : > { %p1532_p6 = scmp.ne.s32.totalorder %s1851_s9, %s1531_s7  ;;  %s1536_s13 = sshll.u32 %s1654_s14, 4  ;;  %s1537_s13 = int_to_ptr.vmem [resolvable:$false] %s1536_s13 }
  0x5c   : > { %s1538_s5 = scalar_lea.vmem %s1537_s13, 4096  ;;  %p1539_p7 = scmp.lt.s32.totalorder %s1851_s9, %s1537_s13 }
  0x5d   : > { %p1534_p13 = pnand %p1532_p6, %p1518_p5  ;;  %p1540_p12 = scmp.lt.s32.totalorder %s1538_s5, %s1531_s7 }
  0x5f   : > { %p1535_p3 = pneg %p1534_p13  ;;  %p1541_p11 = por %p1540_p12, %p1539_p7 }
  0x61   : > { %p1542_p1 = pnand %p1541_p11, %p1535_p3 }
  0x63   : > { %1545 = shalt.err (!%p1542_p1)
}
  0x64   : > { %s1655_s24 = smov 128   ;;  %s1656_s23 = smov 8  }
  0x65   : > { %1356 = dma.hbm_to_vmem [thread:$0]  (!%p1847_p0), %s1843_s28, 2048, %s1851_s9, %s1853_s6, %s1655_s24, %s1655_s24, %s1656_s23  }
  0x66   : > { %p2160_p5 = scmp.ne.s32.totalorder %s2154_s29, 0 }
  0x67   : > { %s1884_s26 = sand.u32 (!%p2160_p5), 1, %s1624_s16   ;;  %p2161_p9 = scmp.ne.s32.totalorder (!%p2160_p5), %s2151_s27, 0 }
  0x68   : > { %218 = sbr.rel (%p2160_p5) target bundleno = 815 (0x32f), region = 36  ;;  %s1173_s7 = sshll.u32 (!%p2160_p5), %s1884_s26, 7 }
  0x69   : > { %s221_s14 = scalar_lea.sflag (!%p2160_p5), [#allocation6], %s1884_s26  ;;  %s1888_s13 = scalar_lea.vmem (!%p2160_p5), [#allocation5], %s1173_s7 }
  0x6f   : > { %1607 = dma.done.wait (%p2161_p9), %s221_s14, 2048  }
  0x70   : > { %1609 = vsyncadd (%p2161_p9), %s221_s14, 4294965248  ;;  %p2162_p0 = scmp.ne.s32.totalorder %s2149_s25, 0 }
  0x72   : > { %1611 = dma.done.wait (%p2162_p0), [#allocation9], 2048  }
  0x73   : > { %1613 = vsyncadd (%p2162_p0), [#allocation9], 4294965248  ;;  %p261_p2 = scmp.eq.s32.totalorder %s1636_s19, 0  ;;  %p262_p10 = scmp.eq.s32.totalorder %s1632_s18, 0  ;;  %v1903_v0 = vld [vmem:[%s2142_s3] sm:$0x1f] }
  0x74   : > { %s1905_s9 = scalar_lea.vmem [#allocation11], %s1173_s7 }
  0x75   : > { %p263_p4 = pnand %p262_p10, %p261_p2 }
  0x76   : > { %v1657_v1 = vmov (!%p263_p4), 0.0  }
  0x77   : > { %266 = sbr.rel (%p263_p4) target bundleno = 126 (0x7e), region = 52  ;;  %267 = vst [vmem:[#allocation4] sm:$0xf] (!%p263_p4), %v1657_v1 }
  0x7e PF: > { %p1177_p6 = scmp.ne.s32.totalorder %s1636_s19, 0 }
  0x7f   : > { %v1440_v2 = vld [vmem:[#allocation8] sm:$0xff] (!%p1177_p6)   ;;  %v1441_v3 = vld [vmem:[#allocation8 + $0x8] sm:$0xff] (!%p1177_p6)   ;;  %v1442_v4 = vld [vmem:[#allocation8 + $0x10] sm:$0xff] (!%p1177_p6)   ;;  %v311_v34 = vlaneseq (!%p1177_p6)  ;;  %s1186_s25 = sshll.u32 (!%p1177_p6), %s1632_s18, 7 }
  0x80   : > { %270 = sbr.rel (%p1177_p6) target bundleno = 426 (0x1aa), region = 56  ;;  %1238 = vmatprep.subr.bf16.mxu0 (!%p1177_p6), %v1440_v2  ;;  %1302 = vmatprep.subr.bf16.mxu1 (!%p1177_p6), %v1440_v2  ;;  %v1443_v5 = vld [vmem:[#allocation8 + $0x18] sm:$0xff] (!%p1177_p6)   ;;  %v271_v6 = vld [vmem:[%s1888_s13] sm:$0xff] (!%p1177_p6)  ;;  %v272_v7 = vld [vmem:[%s1888_s13 + $0x8] sm:$0xff] (!%p1177_p6)  ;;  %s1940_s27 = scalar_lea.vmem (!%p1177_p6), [#allocation2], %s1186_s25 }
  0x81   : > { %1239 = vmatpush3.bf16.msra.mxu0 (!%p1177_p6), %v1440_v2  ;;  %1310 = vmatpush3.bf16.msra.mxu1 (!%p1177_p6), %v1440_v2  ;;  %v287_v8 = vpack.c.bf16 (!%p1177_p6), %v272_v7, %v271_v6  ;;  %v279_v9 = vld [vmem:[%s1888_s13 + $0x40] sm:$0xff] (!%p1177_p6)  ;;  %v280_v10 = vld [vmem:[%s1888_s13 + $0x48] sm:$0xff] (!%p1177_p6)  ;;  %v1446_v14 = vld [vmem:[#allocation8 + $0x30] sm:$0xff] (!%p1177_p6)   ;;  %v312_v35 = vshrl.u32 (!%p1177_p6), %v311_v34, 7 }
  0x82   : > { %1240 = vmatprep.subr.bf16.mxu0 (!%p1177_p6), %v1441_v3  ;;  %1303 = vmatprep.subr.bf16.mxu1 (!%p1177_p6), %v1441_v3  ;;  %v1444_v11 = vld [vmem:[#allocation8 + $0x20] sm:$0xff] (!%p1177_p6)   ;;  %v291_v12 = vpack.c.bf16 (!%p1177_p6), %v280_v10, %v279_v9  ;;  %v1445_v13 = vld [vmem:[#allocation8 + $0x28] sm:$0xff] (!%p1177_p6)   ;;  %v1447_v15 = vld [vmem:[#allocation8 + $0x38] sm:$0xff] (!%p1177_p6)  }
  0x83   : > { %1254 = vmatprep.mubr.bf16.mxu0 (!%p1177_p6), %v287_v8  ;;  %v273_v16 = vld [vmem:[%s1888_s13 + $0x10] sm:$0xff] (!%p1177_p6)  ;;  %v274_v17 = vld [vmem:[%s1888_s13 + $0x18] sm:$0xff] (!%p1177_p6)  ;;  %v275_v18 = vld [vmem:[%s1888_s13 + $0x20] sm:$0xff] (!%p1177_p6)  ;;  %v313_v36 = vsub.s32 (!%p1177_p6), 0, %v312_v35 }
  0x84   : > { %1262 = vmatprep.mubr.bf16.mxu1 (!%p1177_p6), %v291_v12  ;;  %v281_v19 = vld [vmem:[%s1888_s13 + $0x50] sm:$0xff] (!%p1177_p6)  ;;  %v282_v20 = vld [vmem:[%s1888_s13 + $0x58] sm:$0xff] (!%p1177_p6)  ;;  %v276_v21 = vld [vmem:[%s1888_s13 + $0x28] sm:$0xff] (!%p1177_p6)  ;;  %v288_v24 = vpack.c.bf16 (!%p1177_p6), %v274_v17, %v273_v16 }
  0x85   : > { %1241 = vmatpush3.bf16.msra.mxu0 (!%p1177_p6), %v1441_v3  ;;  %1311 = vmatpush3.bf16.msra.mxu1 (!%p1177_p6), %v1441_v3  ;;  %v283_v22 = vld [vmem:[%s1888_s13 + $0x60] sm:$0xff] (!%p1177_p6)  ;;  %v284_v23 = vld [vmem:[%s1888_s13 + $0x68] sm:$0xff] (!%p1177_p6)  ;;  %v292_v25 = vpack.c.bf16 (!%p1177_p6), %v282_v20, %v281_v19  ;;  %v289_v26 = vpack.c.bf16 (!%p1177_p6), %v276_v21, %v275_v18  ;;  %v277_v28 = vld [vmem:[%s1888_s13 + $0x30] sm:$0xff] (!%p1177_p6)  ;;  %v1925_v37 = vrot.slane (!%p1177_p6), %v1903_v0, %v313_v36 }
  0x86   : > { %1242 = vmatprep.subr.bf16.mxu0 (!%p1177_p6), %v1442_v4  ;;  %1304 = vmatprep.subr.bf16.mxu1 (!%p1177_p6), %v1442_v4  ;;  %v293_v27 = vpack.c.bf16 (!%p1177_p6), %v284_v23, %v283_v22  ;;  %v278_v29 = vld [vmem:[%s1888_s13 + $0x38] sm:$0xff] (!%p1177_p6)  ;;  %v285_v30 = vld [vmem:[%s1888_s13 + $0x70] sm:$0xff] (!%p1177_p6) }
  0x87   : > { %v286_v31 = vld [vmem:[%s1888_s13 + $0x78] sm:$0xff]  ;;  %v290_v32 = vpack.c.bf16 %v278_v29, %v277_v28 }
  0x88   : > { %v294_v33 = vpack.c.bf16 %v286_v31, %v285_v30 }
  0x89   : > { %1243 = vmatpush3.bf16.msra.mxu0 %v1442_v4  ;;  %1312 = vmatpush3.bf16.msra.mxu1 %v1442_v4 }
  0x8a   : > { %1244 = vmatprep.subr.bf16.mxu0 %v1443_v5  ;;  %1305 = vmatprep.subr.bf16.mxu1 %v1443_v5 }
  0x8d   : > { %1245 = vmatpush3.bf16.msra.mxu0 %v1443_v5  ;;  %1313 = vmatpush3.bf16.msra.mxu1 %v1443_v5 }
  0x8e   : > { %1246 = vmatprep.subr.bf16.mxu0 %v1444_v11  ;;  %1306 = vmatprep.subr.bf16.mxu1 %v1444_v11 }
  0x91   : > { %1247 = vmatpush3.bf16.msra.mxu0 %v1444_v11  ;;  %1314 = vmatpush3.bf16.msra.mxu1 %v1444_v11 }
  0x92   : > { %1248 = vmatprep.subr.bf16.mxu0 %v1445_v13  ;;  %1307 = vmatprep.subr.bf16.mxu1 %v1445_v13 }
  0x95   : > { %1249 = vmatpush3.bf16.msra.mxu0 %v1445_v13  ;;  %1315 = vmatpush3.bf16.msra.mxu1 %v1445_v13 }
  0x96   : > { %1250 = vmatprep.subr.bf16.mxu0 %v1446_v14  ;;  %1308 = vmatprep.subr.bf16.mxu1 %v1446_v14 }
  0x99   : > { %1251 = vmatpush3.bf16.msra.mxu0 %v1446_v14  ;;  %1316 = vmatpush3.bf16.msra.mxu1 %v1446_v14 }
  0x9a   : > { %1252 = vmatprep.subr.bf16.mxu0 %v1447_v15  ;;  %1309 = vmatprep.subr.bf16.mxu1 %v1447_v15 }
  0x9d   : > { %1253 = vmatpush3.bf16.msra.mxu0 %v1447_v15  ;;  %1317 = vmatpush3.bf16.msra.mxu1 %v1447_v15 }
  0xa0   : > { %1255 = vmatmul.mubr.bf16.vlgmr.msra.gmra.mrb[0].mxu0 %v288_v24  ;;  %1263 = vmatmul.mubr.bf16.vlgmr.msra.gmra.mrb[0].mxu1 %v292_v25 }
  0xa1   : > { %1258 = vmatprep.mubr.bf16.mxu0 %v289_v26  ;;  %1266 = vmatprep.mubr.bf16.mxu1 %v293_v27 }
  0xa8   : > { %1259 = vmatmul.mubr.bf16.gmra.mrb[4].mxu0 %v290_v32  ;;  %1267 = vmatmul.mubr.bf16.gmra.mrb[4].mxu1 %v294_v33 }
 0x173   : > { %v1256_v38 = vpop.f32.mrb[0].mxu0  ;;  %v1264_v39 = vpop.f32.mrb[0].mxu1 }
 0x174   : > { %v406_v40 = vadd.f32 %v1256_v38, %v1925_v37  ;;  %v397_v41 = vpop.f32.mrb[1].mxu0  ;;  %v438_v42 = vadd.f32 %v1264_v39, %v1925_v37  ;;  %v429_v43 = vpop.f32.mrb[1].mxu1 }
 0x175   : > { %v398_v44 = vadd.f32 %v397_v41, %v1925_v37  ;;  %v1257_v45 = vpop.f32.mrb[2].mxu0  ;;  %v430_v46 = vadd.f32 %v429_v43, %v1925_v37  ;;  %v1265_v47 = vpop.f32.mrb[2].mxu1 }
 0x176   : > { %v462_v48 = vmax.f32 %v406_v40, 0.0  ;;  %v409_v49 = vadd.f32 %v1257_v45, %v1925_v37  ;;  %v400_v50 = vpop.f32.mrb[3].mxu0  ;;  %v1933_v51 = vmax.f32 %v438_v42, 0.0  ;;  %v441_v52 = vadd.f32 %v1265_v47, %v1925_v37  ;;  %v432_v53 = vpop.f32.mrb[3].mxu1 }
 0x177   : > { %v460_v54 = vmax.f32 %v398_v44, 0.0  ;;  %v401_v55 = vadd.f32 %v400_v50, %v1925_v37  ;;  %v1937_v56 = vmax.f32 %v430_v46, 0.0  ;;  %v433_v57 = vadd.f32 %v432_v53, %v1925_v37 }
 0x178   : > { %480 = vst [vmem:[%s1940_s27 + $0x10] sm:$0xff] %v462_v48  ;;  %v463_v58 = vmax.f32 %v409_v49, 0.0  ;;  %488 = vst [vmem:[%s1940_s27 + $0x50] sm:$0xff] %v1933_v51  ;;  %v1945_v59 = vmax.f32 %v441_v52, 0.0  ;;  %v521_v4 = vmul.f32 %v462_v48, %v462_v48  ;;  %v529_v50 = vmul.f32 %v1933_v51, %v1933_v51 }
 0x179   : > { %478 = vst [vmem:[%s1940_s27] sm:$0xff] %v460_v54  ;;  %v461_v60 = vmax.f32 %v401_v55, 0.0  ;;  %486 = vst [vmem:[%s1940_s27 + $0x40] sm:$0xff] %v1937_v56  ;;  %v469_v61 = vmax.f32 %v433_v57, 0.0  ;;  %v519_v62 = vmul.f32 %v460_v54, %v460_v54  ;;  %v527_v45 = vmul.f32 %v1937_v56, %v1937_v56 }
 0x17a   : > { %481 = vst [vmem:[%s1940_s27 + $0x18] sm:$0xff] %v463_v58  ;;  %489 = vst [vmem:[%s1940_s27 + $0x58] sm:$0xff] %v1945_v59  ;;  %v522_v5 = vmul.f32 %v463_v58, %v463_v58 }
 0x17b   : > { %479 = vst [vmem:[%s1940_s27 + $0x8] sm:$0xff] %v461_v60  ;;  %v495_v63 = vadd.f32 %v461_v60, %v460_v54  ;;  %v520_v1 = vmul.f32 %v461_v60, %v461_v60  ;;  %v1260_v2 = vpop.f32.mrb[4].mxu0  ;;  %487 = vst [vmem:[%s1940_s27 + $0x48] sm:$0xff] %v469_v61  ;;  %v1268_v3 = vpop.f32.mrb[4].mxu1  ;;  %v528_v49 = vmul.f32 %v469_v61, %v469_v61 }
 0x17c   : > { %v422_v6 = vadd.f32 %v1260_v2, %v1925_v37  ;;  %v413_v7 = vpop.f32.mrb[5].mxu0  ;;  %v454_v8 = vadd.f32 %v1268_v3, %v1925_v37  ;;  %v445_v9 = vpop.f32.mrb[5].mxu1  ;;  %v530_v54 = vmul.f32 %v1945_v59, %v1945_v59 }
 0x17d   : > { %v496_v10 = vadd.f32 %v495_v63, %v462_v48  ;;  %v535_v11 = vadd.f32 %v520_v1, %v519_v62  ;;  %v414_v12 = vadd.f32 %v413_v7, %v1925_v37  ;;  %v1261_v13 = vpop.f32.mrb[6].mxu0  ;;  %v446_v14 = vadd.f32 %v445_v9, %v1925_v37  ;;  %v1269_v15 = vpop.f32.mrb[6].mxu1 }
 0x17e   : > { %v466_v16 = vmax.f32 %v422_v6, 0.0  ;;  %v425_v17 = vadd.f32 %v1261_v13, %v1925_v37  ;;  %v416_v18 = vpop.f32.mrb[7].mxu0  ;;  %v474_v19 = vmax.f32 %v454_v8, 0.0  ;;  %v457_v20 = vadd.f32 %v1269_v15, %v1925_v37  ;;  %v448_v21 = vpop.f32.mrb[7].mxu1  ;;  %v494_v15 = vld [vmem:[#allocation4] sm:$0x1] }
 0x17f   : > { %v536_v22 = vadd.f32 %v535_v11, %v521_v4  ;;  %v464_v23 = vmax.f32 %v414_v12, 0.0  ;;  %v497_v24 = vadd.f32 %v496_v10, %v463_v58  ;;  %v417_v25 = vadd.f32 %v416_v18, %v1925_v37  ;;  %v518_v18 = vld [vmem:[#allocation4 + $0x1] sm:$0x1] }
 0x180   : > { %484 = vst [vmem:[%s1940_s27 + $0x30] sm:$0xff] %v466_v16  ;;  %v467_v26 = vmax.f32 %v425_v17, 0.0  ;;  %492 = vst [vmem:[%s1940_s27 + $0x70] sm:$0xff] %v474_v19  ;;  %v472_v27 = vmax.f32 %v446_v14, 0.0  ;;  %v475_v32 = vmax.f32 %v457_v20, 0.0  ;;  %v449_v33 = vadd.f32 %v448_v21, %v1925_v37 }
 0x181   : > { %482 = vst [vmem:[%s1940_s27 + $0x20] sm:$0xff] %v464_v23  ;;  %v498_v28 = vadd.f32 %v497_v24, %v464_v23  ;;  %v523_v29 = vmul.f32 %v464_v23, %v464_v23  ;;  %v537_v30 = vadd.f32 %v536_v22, %v522_v5  ;;  %v465_v31 = vmax.f32 %v417_v25, 0.0 }
 0x182   : > { %485 = vst [vmem:[%s1940_s27 + $0x38] sm:$0xff] %v467_v26  ;;  %490 = vst [vmem:[%s1940_s27 + $0x60] sm:$0xff] %v472_v27  ;;  %v473_v38 = vmax.f32 %v449_v33, 0.0  ;;  %v525_v39 = vmul.f32 %v466_v16, %v466_v16  ;;  %v526_v42 = vmul.f32 %v467_v26, %v467_v26  ;;  %v531_v58 = vmul.f32 %v472_v27, %v472_v27 }
 0x183   : > { %v538_v34 = vadd.f32 %v537_v30, %v523_v29  ;;  %483 = vst [vmem:[%s1940_s27 + $0x28] sm:$0xff] %v465_v31  ;;  %v499_v35 = vadd.f32 %v498_v28, %v465_v31  ;;  %v524_v36 = vmul.f32 %v465_v31, %v465_v31  ;;  %493 = vst [vmem:[%s1940_s27 + $0x78] sm:$0xff] %v475_v32 }
 0x184   : > { %491 = vst [vmem:[%s1940_s27 + $0x68] sm:$0xff] %v473_v38  ;;  %v532_v1 = vmul.f32 %v473_v38, %v473_v38  ;;  %v533_v2 = vmul.f32 %v474_v19, %v474_v19  ;;  %v534_v4 = vmul.f32 %v475_v32, %v475_v32 }
 0x185   : > { %v500_v40 = vadd.f32 %v499_v35, %v466_v16  ;;  %v539_v41 = vadd.f32 %v538_v34, %v524_v36 }
 0x187   : > { %v540_v43 = vadd.f32 %v539_v41, %v525_v39  ;;  %v501_v44 = vadd.f32 %v500_v40, %v467_v26 }
 0x189   : > { %v502_v46 = vadd.f32 %v501_v44, %v1937_v56  ;;  %v541_v47 = vadd.f32 %v540_v43, %v526_v42 }
 0x18b   : > { %v542_v37 = vadd.f32 %v541_v47, %v527_v45  ;;  %v503_v48 = vadd.f32 %v502_v46, %v469_v61 }
 0x18d   : > { %v504_v52 = vadd.f32 %v503_v48, %v1933_v51  ;;  %v543_v53 = vadd.f32 %v542_v37, %v528_v49 }
 0x18f   : > { %v544_v55 = vadd.f32 %v543_v53, %v529_v50  ;;  %v505_v57 = vadd.f32 %v504_v52, %v1945_v59 }
 0x191   : > { %v506_v60 = vadd.f32 %v505_v57, %v472_v27  ;;  %v545_v62 = vadd.f32 %v544_v55, %v530_v54 }
 0x193   : > { %v546_v56 = vadd.f32 %v545_v62, %v531_v58  ;;  %v507_v63 = vadd.f32 %v506_v60, %v473_v38 }
 0x195   : > { %v508_v61 = vadd.f32 %v507_v63, %v474_v19  ;;  %v547_v3 = vadd.f32 %v546_v56, %v532_v1 }
 0x197   : > { %v509_v5 = vadd.f32 %v508_v61, %v475_v32  ;;  %v548_v6 = vadd.f32 %v547_v3, %v533_v2 }
 0x199   : > { %v510_v51 = vrot.slane %v509_v5, 4  ;;  %v549_v7 = vadd.f32 %v548_v6, %v534_v4 }
 0x19b   : > { %v511_v8 = vadd.f32 %v510_v51, %v509_v5  ;;  %v550_v9 = vrot.slane %v549_v7, 4 }
 0x19d   : > { %v512_v10 = vrot.slane %v511_v8, 2  ;;  %v551_v11 = vadd.f32 %v550_v9, %v549_v7 }
 0x19f   : > { %v513_v12 = vadd.f32 %v512_v10, %v511_v8  ;;  %v552_v59 = vrot.slane %v551_v11, 2 }
 0x1a1   : > { %v514_v13 = vrot.slane %v513_v12, 1  ;;  %v553_v14 = vadd.f32 %v552_v59, %v551_v11 }
 0x1a3   : > { %v515_v16 = vadd.f32 %v514_v13, %v513_v12  ;;  %v554_v17 = vrot.slane %v553_v14, 1 }
 0x1a5   : > { %v516_v20 = vadd.f32 %v515_v16, %v494_v15  ;;  %v555_v19 = vadd.f32 %v554_v17, %v553_v14 }
 0x1a7   : > { %517 = vst [vmem:[#allocation4] sm:$0x1] %v516_v20  ;;  %v556_v21 = vadd.f32 %v555_v19, %v518_v18 }
 0x1a9   : > { %557 = vst [vmem:[#allocation4 + $0x1] sm:$0x1] %v556_v21 }
 0x1aa PF: > { %p1187_p13 = scmp.ne.s32.totalorder %s1636_s19, 1 }
 0x1ab   : > { %v1448_v22 = vld [vmem:[#allocation10] sm:$0xff] (!%p1187_p13)   ;;  %v1449_v23 = vld [vmem:[#allocation10 + $0x8] sm:$0xff] (!%p1187_p13)   ;;  %v1450_v24 = vld [vmem:[#allocation10 + $0x10] sm:$0xff] (!%p1187_p13)   ;;  %v601_v38 = vlaneseq (!%p1187_p13)  ;;  %s1188_s12 = sshll.u32 (!%p1187_p13), %s1632_s18, 7 }
 0x1ac   : > { %561 = sbr.rel (%p1187_p13) target bundleno = 733 (0x2dd), region = 60  ;;  %1270 = vmatprep.subr.bf16.mxu0 (!%p1187_p13), %v1448_v22  ;;  %1318 = vmatprep.subr.bf16.mxu1 (!%p1187_p13), %v1448_v22  ;;  %v1451_v25 = vld [vmem:[#allocation10 + $0x18] sm:$0xff] (!%p1187_p13)   ;;  %v1452_v31 = vld [vmem:[#allocation10 + $0x20] sm:$0xff] (!%p1187_p13)   ;;  %v1453_v34 = vld [vmem:[#allocation10 + $0x28] sm:$0xff] (!%p1187_p13)   ;;  %s1985_s6 = scalar_lea.vmem (!%p1187_p13), [#allocation2], %s1188_s12 }
 0x1ad   : > { %1271 = vmatpush3.bf16.msra.mxu0 (!%p1187_p13), %v1448_v22  ;;  %1326 = vmatpush3.bf16.msra.mxu1 (!%p1187_p13), %v1448_v22  ;;  %v1454_v36 = vld [vmem:[#allocation10 + $0x30] sm:$0xff] (!%p1187_p13)   ;;  %v1455_v39 = vld [vmem:[#allocation10 + $0x38] sm:$0xff] (!%p1187_p13)   ;;  %v602_v40 = vshrl.u32 (!%p1187_p13), %v601_v38, 7  ;;  %v565_v48 = vld [vmem:[%s1985_s6 + $0x8] sm:$0xff] (!%p1187_p13)  ;;  %s2006_s5 = scalar_lea.vmem (!%p1187_p13), [#allocation3], %s1188_s12 }
 0x1ae   : > { %1272 = vmatprep.subr.bf16.mxu0 (!%p1187_p13), %v1449_v23  ;;  %1319 = vmatprep.subr.bf16.mxu1 (!%p1187_p13), %v1449_v23  ;;  %v580_v26 = vld [vmem:[#allocation4] sm:$0x1] (!%p1187_p13)  ;;  %v566_v49 = vld [vmem:[%s1985_s6 + $0x10] sm:$0xff] (!%p1187_p13)  ;;  %v567_v50 = vld [vmem:[%s1985_s6 + $0x18] sm:$0xff] (!%p1187_p13) }
 0x1af   : > { %v581_v27 = vmul.f32 (!%p1187_p13), 0.00390625, %v580_v26  ;;  %v603_v43 = vsub.s32 (!%p1187_p13), 1, %v602_v40  ;;  %v564_v47 = vld [vmem:[%s1985_s6] sm:$0xff] (!%p1187_p13)  ;;  %v623_v53 = vsub.s32 (!%p1187_p13), 2, %v602_v40  ;;  %v569_v55 = vld [vmem:[%s1985_s6 + $0x28] sm:$0xff] (!%p1187_p13)  ;;  %v570_v57 = vld [vmem:[%s1985_s6 + $0x30] sm:$0xff] (!%p1187_p13) }
 0x1b0   : > { %v582_v28 = vld [vmem:[#allocation4 + $0x1] sm:$0x1] (!%p1187_p13)  ;;  %v573_v62 = vld [vmem:[%s1985_s6 + $0x48] sm:$0xff] (!%p1187_p13)  ;;  %v574_v56 = vld [vmem:[%s1985_s6 + $0x50] sm:$0xff] (!%p1187_p13) }
 0x1b1   : > { %1273 = vmatpush3.bf16.msra.mxu0 (!%p1187_p13), %v1449_v23  ;;  %1327 = vmatpush3.bf16.msra.mxu1 (!%p1187_p13), %v1449_v23  ;;  %v583_v29 = vmul.f32 (!%p1187_p13), 0.00390625, %v582_v28  ;;  %v584_v30 = vmul.f32 (!%p1187_p13), %v581_v27, %v581_v27  ;;  %v568_v54 = vld [vmem:[%s1985_s6 + $0x20] sm:$0xff] (!%p1187_p13)  ;;  %v575_v3 = vld [vmem:[%s1985_s6 + $0x58] sm:$0xff] (!%p1187_p13)  ;;  %v577_v5 = vld [vmem:[%s1985_s6 + $0x68] sm:$0xff] (!%p1187_p13) }
 0x1b2   : > { %1274 = vmatprep.subr.bf16.mxu0 (!%p1187_p13), %v1450_v24  ;;  %1320 = vmatprep.subr.bf16.mxu1 (!%p1187_p13), %v1450_v24  ;;  %v572_v60 = vld [vmem:[%s1985_s6 + $0x40] sm:$0xff] (!%p1187_p13)  ;;  %v571_v8 = vld [vmem:[%s1985_s6 + $0x38] sm:$0xff] (!%p1187_p13)  ;;  %v578_v12 = vld [vmem:[%s1985_s6 + $0x70] sm:$0xff] (!%p1187_p13) }
 0x1b3   : > { %v585_v32 = vsub.f32 %v583_v29, %v584_v30  ;;  %v576_v4 = vld [vmem:[%s1985_s6 + $0x60] sm:$0xff]  ;;  %v579_v19 = vld [vmem:[%s1985_s6 + $0x78] sm:$0xff] }
 0x1b5   : > { %1275 = vmatpush3.bf16.msra.mxu0 %v1450_v24  ;;  %1328 = vmatpush3.bf16.msra.mxu1 %v1450_v24  ;;  %v586_v33 = vmax.f32 %v585_v32, 0.0 }
 0x1b6   : > { %1276 = vmatprep.subr.bf16.mxu0 %v1451_v25  ;;  %1321 = vmatprep.subr.bf16.mxu1 %v1451_v25 }
 0x1b7   : > { %v587_v35 = vadd.f32 1e-05, %v586_v33 }
 0x1b9   : > { %1277 = vmatpush3.bf16.msra.mxu0 %v1451_v25  ;;  %1329 = vmatpush3.bf16.msra.mxu1 %v1451_v25  ;;  %1456 = vrsqrt.f32 %v587_v35 }
 0x1ba   : > { %1278 = vmatprep.subr.bf16.mxu0 %v1452_v31  ;;  %1322 = vmatprep.subr.bf16.mxu1 %v1452_v31 }
 0x1bd   : > { %1279 = vmatpush3.bf16.msra.mxu0 %v1452_v31  ;;  %1330 = vmatpush3.bf16.msra.mxu1 %v1452_v31 }
 0x1be   : > { %1280 = vmatprep.subr.bf16.mxu0 %v1453_v34  ;;  %1323 = vmatprep.subr.bf16.mxu1 %v1453_v34 }
 0x1c1   : > { %1281 = vmatpush3.bf16.msra.mxu0 %v1453_v34  ;;  %1331 = vmatpush3.bf16.msra.mxu1 %v1453_v34 }
 0x1c2   : > { %1282 = vmatprep.subr.bf16.mxu0 %v1454_v36  ;;  %1324 = vmatprep.subr.bf16.mxu1 %v1454_v36 }
 0x1c3   : > { %v1457_v41 = vpop.eup %1456 }
 0x1c4   : > { %v590_v42 = vrot.slane %v1457_v41, 7 }
 0x1c5   : > { %1283 = vmatpush3.bf16.msra.mxu0 %v1454_v36  ;;  %1332 = vmatpush3.bf16.msra.mxu1 %v1454_v36 }
 0x1c6   : > { %1284 = vmatprep.subr.bf16.mxu0 %v1455_v39  ;;  %1325 = vmatprep.subr.bf16.mxu1 %v1455_v39  ;;  %v592_v44 = vmul.f32 %v590_v42, %v1903_v0 }
 0x1c8   : > { %v594_v45 = vrot.slane %v592_v44, 1  ;;  %v604_v46 = vrot.slane %v592_v44, %v603_v43 }
 0x1c9   : > { %1285 = vmatpush3.bf16.msra.mxu0 %v1455_v39  ;;  %1333 = vmatpush3.bf16.msra.mxu1 %v1455_v39 }
 0x1ca   : > { %v596_v37 = vmul.f32 %v594_v45, %v581_v27  ;;  %v605_v58 = vmul.f32 %v604_v46, %v564_v47  ;;  %v606_v1 = vmul.f32 %v604_v46, %v565_v48  ;;  %v607_v2 = vmul.f32 %v604_v46, %v566_v49 }
 0x1cb   : > { %v608_v61 = vmul.f32 %v604_v46, %v567_v50  ;;  %v609_v6 = vmul.f32 %v604_v46, %v568_v54  ;;  %v610_v51 = vmul.f32 %v604_v46, %v569_v55  ;;  %v611_v9 = vmul.f32 %v604_v46, %v570_v57 }
 0x1cc   : > { %v598_v52 = vrot.slane %v596_v37, 6  ;;  %v613_v10 = vmul.f32 %v604_v46, %v572_v60  ;;  %v614_v11 = vmul.f32 %v604_v46, %v573_v62  ;;  %v615_v59 = vmul.f32 %v604_v46, %v574_v56 }
 0x1cd   : > { %v616_v13 = vmul.f32 %v604_v46, %v575_v3  ;;  %v617_v14 = vmul.f32 %v604_v46, %v576_v4  ;;  %v618_v15 = vmul.f32 %v604_v46, %v577_v5  ;;  %v612_v23 = vmul.f32 %v604_v46, %v571_v8 }
 0x1ce   : > { %v600_v63 = vsub.f32 %v1903_v0, %v598_v52  ;;  %v619_v24 = vmul.f32 %v604_v46, %v578_v12  ;;  %v620_v32 = vmul.f32 %v604_v46, %v579_v19 }
 0x1d0   : > { %v624_v7 = vrot.slane %v600_v63, %v623_v53 }
 0x1d2   : > { %v625_v16 = vadd.f32 %v624_v7, %v605_v58  ;;  %v626_v17 = vadd.f32 %v624_v7, %v606_v1  ;;  %v627_v18 = vadd.f32 %v624_v7, %v607_v2  ;;  %v628_v20 = vadd.f32 %v624_v7, %v608_v61 }
 0x1d3   : > { %v629_v21 = vadd.f32 %v624_v7, %v609_v6  ;;  %v630_v22 = vadd.f32 %v624_v7, %v610_v51  ;;  %v633_v27 = vadd.f32 %v624_v7, %v613_v10  ;;  %v634_v28 = vadd.f32 %v624_v7, %v614_v11 }
 0x1d4   : > { %v641_v25 = vpack.c.bf16 %v626_v17, %v625_v16  ;;  %v642_v26 = vpack.c.bf16 %v628_v20, %v627_v18  ;;  %v635_v30 = vadd.f32 %v624_v7, %v615_v59  ;;  %v636_v31 = vadd.f32 %v624_v7, %v616_v13 }
 0x1d5   : > { %v643_v29 = vpack.c.bf16 %v630_v22, %v629_v21  ;;  %v645_v33 = vpack.c.bf16 %v634_v28, %v633_v27  ;;  %v637_v34 = vadd.f32 %v624_v7, %v617_v14  ;;  %v638_v35 = vadd.f32 %v624_v7, %v618_v15 }
 0x1d6   : > { %1286 = vmatprep.mubr.bf16.mxu0 %v641_v25  ;;  %v631_v36 = vadd.f32 %v624_v7, %v611_v9  ;;  %v632_v38 = vadd.f32 %v624_v7, %v612_v23  ;;  %v646_v39 = vpack.c.bf16 %v636_v31, %v635_v30  ;;  %v639_v41 = vadd.f32 %v624_v7, %v619_v24 }
 0x1d7   : > { %1287 = vmatmul.mubr.bf16.vlgmr.msra.gmra.mrb[0].mxu0 %v642_v26  ;;  %1294 = vmatprep.mubr.bf16.mxu1 %v645_v33  ;;  %v647_v40 = vpack.c.bf16 %v638_v35, %v637_v34  ;;  %v640_v42 = vadd.f32 %v624_v7, %v620_v32 }
 0x1d8   : > { %1290 = vmatprep.mubr.bf16.mxu0 %v643_v29  ;;  %1295 = vmatmul.mubr.bf16.vlgmr.msra.gmra.mrb[0].mxu1 %v646_v39  ;;  %v644_v43 = vpack.c.bf16 %v632_v38, %v631_v36 }
 0x1d9   : > { %1298 = vmatprep.mubr.bf16.mxu1 %v647_v40  ;;  %v648_v44 = vpack.c.bf16 %v640_v42, %v639_v41 }
 0x1df   : > { %1291 = vmatmul.mubr.bf16.gmra.mrb[4].mxu0 %v644_v43 }
 0x1e0   : > { %1299 = vmatmul.mubr.bf16.gmra.mrb[4].mxu1 %v648_v44 }
 0x2aa   : > { %v1288_v45 = vpop.f32.mrb[0].mxu0 }
 0x2ab   : > { %813 = vst [vmem:[%s2006_s5 + $0x10] sm:$0xff] %v1288_v45  ;;  %v747_v46 = vpop.f32.mrb[1].mxu0  ;;  %v1296_v37 = vpop.f32.mrb[0].mxu1  ;;  %v854_v57 = vmul.f32 %v1288_v45, %v1288_v45 }
 0x2ac   : > { %811 = vst [vmem:[%s2006_s5] sm:$0xff] %v747_v46  ;;  %v1289_v47 = vpop.f32.mrb[2].mxu0  ;;  %821 = vst [vmem:[%s2006_s5 + $0x50] sm:$0xff] %v1296_v37  ;;  %v779_v49 = vpop.f32.mrb[1].mxu1  ;;  %v852_v50 = vmul.f32 %v747_v46, %v747_v46  ;;  %v862_v24 = vmul.f32 %v1296_v37, %v1296_v37 }
 0x2ad   : > { %814 = vst [vmem:[%s2006_s5 + $0x18] sm:$0xff] %v1289_v47  ;;  %v750_v48 = vpop.f32.mrb[3].mxu0  ;;  %819 = vst [vmem:[%s2006_s5 + $0x40] sm:$0xff] %v779_v49  ;;  %v1297_v54 = vpop.f32.mrb[2].mxu1  ;;  %v855_v62 = vmul.f32 %v1289_v47, %v1289_v47  ;;  %v860_v18 = vmul.f32 %v779_v49, %v779_v49 }
 0x2ae   : > { %812 = vst [vmem:[%s2006_s5 + $0x8] sm:$0xff] %v750_v48  ;;  %v828_v52 = vadd.f32 %v750_v48, %v747_v46  ;;  %v853_v53 = vmul.f32 %v750_v48, %v750_v48  ;;  %822 = vst [vmem:[%s2006_s5 + $0x58] sm:$0xff] %v1297_v54  ;;  %v782_v55 = vpop.f32.mrb[3].mxu1  ;;  %v863_v27 = vmul.f32 %v1297_v54, %v1297_v54 }
 0x2af   : > { %820 = vst [vmem:[%s2006_s5 + $0x48] sm:$0xff] %v782_v55  ;;  %v861_v23 = vmul.f32 %v782_v55, %v782_v55 }
 0x2b0   : > { %v829_v58 = vadd.f32 %v1288_v45, %v828_v52  ;;  %v868_v60 = vadd.f32 %v853_v53, %v852_v50  ;;  %v827_v53 = vld [vmem:[#allocation4 + $0x2] sm:$0x1] }
 0x2b2   : > { %v869_v56 = vadd.f32 %v868_v60, %v854_v57  ;;  %v1292_v63 = vpop.f32.mrb[4].mxu0  ;;  %v830_v1 = vadd.f32 %v1289_v47, %v829_v58  ;;  %v851_v57 = vld [vmem:[#allocation4 + $0x3] sm:$0x1] }
 0x2b3   : > { %817 = vst [vmem:[%s2006_s5 + $0x30] sm:$0xff] %v1292_v63  ;;  %v763_v2 = vpop.f32.mrb[5].mxu0  ;;  %v1300_v6 = vpop.f32.mrb[4].mxu1  ;;  %v858_v59 = vmul.f32 %v1292_v63, %v1292_v63 }
 0x2b4   : > { %815 = vst [vmem:[%s2006_s5 + $0x20] sm:$0xff] %v763_v2  ;;  %v831_v61 = vadd.f32 %v830_v1, %v763_v2  ;;  %v856_v3 = vmul.f32 %v763_v2, %v763_v2  ;;  %v870_v4 = vadd.f32 %v869_v56, %v855_v62  ;;  %v1293_v5 = vpop.f32.mrb[6].mxu0  ;;  %825 = vst [vmem:[%s2006_s5 + $0x70] sm:$0xff] %v1300_v6  ;;  %v795_v7 = vpop.f32.mrb[5].mxu1 }
 0x2b5   : > { %818 = vst [vmem:[%s2006_s5 + $0x38] sm:$0xff] %v1293_v5  ;;  %v766_v51 = vpop.f32.mrb[7].mxu0  ;;  %823 = vst [vmem:[%s2006_s5 + $0x60] sm:$0xff] %v795_v7  ;;  %v1301_v11 = vpop.f32.mrb[6].mxu1  ;;  %v859_v15 = vmul.f32 %v1293_v5, %v1293_v5  ;;  %v864_v30 = vmul.f32 %v795_v7, %v795_v7  ;;  %v866_v36 = vmul.f32 %v1300_v6, %v1300_v6 }
 0x2b6   : > { %v871_v8 = vadd.f32 %v870_v4, %v856_v3  ;;  %816 = vst [vmem:[%s2006_s5 + $0x28] sm:$0xff] %v766_v51  ;;  %v832_v9 = vadd.f32 %v831_v61, %v766_v51  ;;  %v857_v10 = vmul.f32 %v766_v51, %v766_v51  ;;  %826 = vst [vmem:[%s2006_s5 + $0x78] sm:$0xff] %v1301_v11  ;;  %v798_v12 = vpop.f32.mrb[7].mxu1 }
 0x2b7   : > { %824 = vst [vmem:[%s2006_s5 + $0x68] sm:$0xff] %v798_v12  ;;  %v865_v35 = vmul.f32 %v798_v12, %v798_v12  ;;  %v867_v40 = vmul.f32 %v1301_v11, %v1301_v11 }
 0x2b8   : > { %v833_v13 = vadd.f32 %v1292_v63, %v832_v9  ;;  %v872_v14 = vadd.f32 %v871_v8, %v857_v10 }
 0x2ba   : > { %v873_v16 = vadd.f32 %v872_v14, %v858_v59  ;;  %v834_v17 = vadd.f32 %v1293_v5, %v833_v13 }
 0x2bc   : > { %v835_v20 = vadd.f32 %v834_v17, %v779_v49  ;;  %v874_v19 = vadd.f32 %v873_v16, %v859_v15 }
 0x2be   : > { %v875_v21 = vadd.f32 %v874_v19, %v860_v18  ;;  %v836_v22 = vadd.f32 %v835_v20, %v782_v55 }
 0x2c0   : > { %v837_v25 = vadd.f32 %v1296_v37, %v836_v22  ;;  %v876_v26 = vadd.f32 %v875_v21, %v861_v23 }
 0x2c2   : > { %v877_v28 = vadd.f32 %v876_v26, %v862_v24  ;;  %v838_v29 = vadd.f32 %v1297_v54, %v837_v25 }
 0x2c4   : > { %v839_v31 = vadd.f32 %v838_v29, %v795_v7  ;;  %v878_v32 = vadd.f32 %v877_v28, %v863_v27 }
 0x2c6   : > { %v879_v33 = vadd.f32 %v878_v32, %v864_v30  ;;  %v840_v34 = vadd.f32 %v839_v31, %v798_v12 }
 0x2c8   : > { %v841_v38 = vadd.f32 %v1300_v6, %v840_v34  ;;  %v880_v39 = vadd.f32 %v879_v33, %v865_v35 }
 0x2ca   : > { %v842_v41 = vadd.f32 %v1301_v11, %v841_v38  ;;  %v881_v42 = vadd.f32 %v880_v39, %v866_v36 }
 0x2cc   : > { %v843_v43 = vrot.slane %v842_v41, 4  ;;  %v882_v44 = vadd.f32 %v881_v42, %v867_v40 }
 0x2ce   : > { %v844_v45 = vadd.f32 %v843_v43, %v842_v41  ;;  %v883_v46 = vrot.slane %v882_v44, 4 }
 0x2d0   : > { %v845_v47 = vrot.slane %v844_v45, 2  ;;  %v884_v37 = vadd.f32 %v883_v46, %v882_v44 }
 0x2d2   : > { %v846_v48 = vadd.f32 %v845_v47, %v844_v45  ;;  %v885_v49 = vrot.slane %v884_v37, 2 }
 0x2d4   : > { %v847_v50 = vrot.slane %v846_v48, 1  ;;  %v886_v52 = vadd.f32 %v885_v49, %v884_v37 }
 0x2d6   : > { %v848_v54 = vadd.f32 %v847_v50, %v846_v48  ;;  %v887_v55 = vrot.slane %v886_v52, 1 }
 0x2d8   : > { %v849_v58 = vadd.f32 %v848_v54, %v827_v53  ;;  %v888_v60 = vadd.f32 %v887_v55, %v886_v52 }
 0x2da   : > { %850 = vst [vmem:[#allocation4 + $0x2] sm:$0x1] %v849_v58  ;;  %v889_v62 = vadd.f32 %v888_v60, %v851_v57 }
 0x2dc   : > { %890 = vst [vmem:[#allocation4 + $0x3] sm:$0x1] %v889_v62 }
 0x2dd PF: > { %p1197_p3 = scmp.ne.s32.totalorder %s1636_s19, 2 }
 0x2de   : > { %v934_v6 = vlaneseq (!%p1197_p3)  ;;  %s1198_s24 = sshll.u32 (!%p1197_p3), %s1632_s18, 7  ;;  %v974_v43 = vld [vmem:[%s1888_s13] sm:$0xff] (!%p1197_p3)  ;;  %v975_v44 = vld [vmem:[%s1888_s13 + $0x8] sm:$0xff] (!%p1197_p3)  ;;  %v976_v47 = vld [vmem:[%s1888_s13 + $0x10] sm:$0xff] (!%p1197_p3) }
 0x2df   : > { %894 = sbr.rel (%p1197_p3) target bundleno = 790 (0x316), region = 64  ;;  %s896_s19 = scalar_lea.vmem (!%p1197_p3), [#allocation3], %s1198_s24  ;;  %v977_v37 = vld [vmem:[%s1888_s13 + $0x18] sm:$0xff] (!%p1197_p3)  ;;  %v978_v48 = vld [vmem:[%s1888_s13 + $0x20] sm:$0xff] (!%p1197_p3)  ;;  %v979_v60 = vld [vmem:[%s1888_s13 + $0x28] sm:$0xff] (!%p1197_p3) }
 0x2e0   : > { %v935_v51 = vshrl.u32 (!%p1197_p3), %v934_v6, 7  ;;  %v897_v12 = vld [vmem:[%s896_s19] sm:$0xff] (!%p1197_p3)  ;;  %v898_v14 = vld [vmem:[%s896_s19 + $0x8] sm:$0xff] (!%p1197_p3)  ;;  %v899_v15 = vld [vmem:[%s896_s19 + $0x10] sm:$0xff] (!%p1197_p3) }
 0x2e1   : > { %v913_v56 = vld [vmem:[#allocation4 + $0x2] sm:$0x1] (!%p1197_p3)  ;;  %v900_v16 = vld [vmem:[%s896_s19 + $0x18] sm:$0xff] (!%p1197_p3)  ;;  %v902_v18 = vld [vmem:[%s896_s19 + $0x28] sm:$0xff] (!%p1197_p3) }
 0x2e2   : > { %v914_v1 = vmul.f32 (!%p1197_p3), 0.00390625, %v913_v56  ;;  %v936_v9 = vsub.s32 (!%p1197_p3), 3, %v935_v51  ;;  %v901_v17 = vld [vmem:[%s896_s19 + $0x20] sm:$0xff] (!%p1197_p3)  ;;  %v903_v20 = vld [vmem:[%s896_s19 + $0x30] sm:$0xff] (!%p1197_p3)  ;;  %v956_v21 = vsub.s32 (!%p1197_p3), 4, %v935_v51  ;;  %v904_v22 = vld [vmem:[%s896_s19 + $0x38] sm:$0xff] (!%p1197_p3) }
 0x2e3   : > { %v915_v63 = vld [vmem:[#allocation4 + $0x3] sm:$0x1] (!%p1197_p3)  ;;  %v906_v24 = vld [vmem:[%s896_s19 + $0x48] sm:$0xff] (!%p1197_p3)  ;;  %v907_v27 = vld [vmem:[%s896_s19 + $0x50] sm:$0xff] (!%p1197_p3) }
 0x2e4   : > { %v916_v2 = vmul.f32 (!%p1197_p3), 0.00390625, %v915_v63  ;;  %v917_v61 = vmul.f32 (!%p1197_p3), %v914_v1, %v914_v1  ;;  %v905_v23 = vld [vmem:[%s896_s19 + $0x40] sm:$0xff] (!%p1197_p3)  ;;  %v908_v28 = vld [vmem:[%s896_s19 + $0x58] sm:$0xff] (!%p1197_p3)  ;;  %v910_v34 = vld [vmem:[%s896_s19 + $0x68] sm:$0xff] (!%p1197_p3) }
 0x2e5   : > { %v909_v29 = vld [vmem:[%s896_s19 + $0x60] sm:$0xff] (!%p1197_p3)  ;;  %v911_v35 = vld [vmem:[%s896_s19 + $0x70] sm:$0xff] (!%p1197_p3)  ;;  %v912_v36 = vld [vmem:[%s896_s19 + $0x78] sm:$0xff] (!%p1197_p3) }
 0x2e6   : > { %v918_v3 = vsub.f32 %v916_v2, %v917_v61  ;;  %v980_v62 = vld [vmem:[%s1888_s13 + $0x30] sm:$0xff]  ;;  %v981_v56 = vld [vmem:[%s1888_s13 + $0x38] sm:$0xff] }
 0x2e8   : > { %v919_v4 = vmax.f32 %v918_v3, 0.0 }
 0x2ea   : > { %v920_v5 = vadd.f32 1e-05, %v919_v4 }
 0x2ec   : > { %1458 = vrsqrt.f32 %v920_v5 }
 0x2f6   : > { %v1459_v7 = vpop.eup %1458 }
 0x2f7   : > { %v923_v8 = vrot.slane %v1459_v7, 5 }
 0x2f9   : > { %v925_v10 = vmul.f32 %v923_v8, %v1903_v0 }
 0x2fb   : > { %v927_v11 = vrot.slane %v925_v10, 3  ;;  %v937_v59 = vrot.slane %v925_v10, %v936_v9  ;;  %v982_v10 = vld [vmem:[%s1888_s13 + $0x40] sm:$0xff] }
 0x2fd   : > { %v929_v13 = vmul.f32 %v927_v11, %v914_v1  ;;  %v938_v25 = vmul.f32 %v937_v59, %v897_v12  ;;  %v939_v26 = vmul.f32 %v937_v59, %v898_v14  ;;  %v940_v31 = vmul.f32 %v937_v59, %v899_v15  ;;  %v983_v14 = vld [vmem:[%s1888_s13 + $0x48] sm:$0xff]  ;;  %v984_v15 = vld [vmem:[%s1888_s13 + $0x50] sm:$0xff] }
 0x2fe   : > { %v941_v32 = vmul.f32 %v937_v59, %v900_v16  ;;  %v942_v33 = vmul.f32 %v937_v59, %v901_v17  ;;  %v943_v38 = vmul.f32 %v937_v59, %v902_v18  ;;  %v944_v39 = vmul.f32 %v937_v59, %v903_v20 }
 0x2ff   : > { %v931_v19 = vrot.slane %v929_v13, 4  ;;  %v945_v40 = vmul.f32 %v937_v59, %v904_v22  ;;  %v946_v41 = vmul.f32 %v937_v59, %v905_v23  ;;  %v948_v45 = vmul.f32 %v937_v59, %v907_v27  ;;  %v988_v27 = vld [vmem:[%s1888_s13 + $0x70] sm:$0xff] }
 0x300   : > { %v949_v46 = vmul.f32 %v937_v59, %v908_v28  ;;  %v950_v49 = vmul.f32 %v937_v59, %v909_v29  ;;  %v951_v50 = vmul.f32 %v937_v59, %v910_v34  ;;  %v952_v52 = vmul.f32 %v937_v59, %v911_v35  ;;  %v989_v28 = vld [vmem:[%s1888_s13 + $0x78] sm:$0xff] }
 0x301   : > { %v933_v30 = vsub.f32 %v1903_v0, %v931_v19  ;;  %v947_v0 = vmul.f32 %v937_v59, %v906_v24  ;;  %v953_v53 = vmul.f32 %v937_v59, %v912_v36  ;;  %v985_v19 = vld [vmem:[%s1888_s13 + $0x58] sm:$0xff] }
 0x303   : > { %v2028_v42 = vrot.slane %v933_v30, %v956_v21  ;;  %v986_v21 = vld [vmem:[%s1888_s13 + $0x60] sm:$0xff] }
 0x305   : > { %v958_v54 = vadd.f32 %v2028_v42, %v938_v25  ;;  %v959_v55 = vadd.f32 %v2028_v42, %v939_v26  ;;  %v960_v57 = vadd.f32 %v2028_v42, %v940_v31  ;;  %v961_v58 = vadd.f32 %v2028_v42, %v941_v32  ;;  %v987_v26 = vld [vmem:[%s1888_s13 + $0x68] sm:$0xff] }
 0x306   : > { %v962_v63 = vadd.f32 %v2028_v42, %v942_v33  ;;  %v963_v1 = vadd.f32 %v2028_v42, %v943_v38  ;;  %v964_v2 = vadd.f32 %v2028_v42, %v944_v39  ;;  %v965_v61 = vadd.f32 %v2028_v42, %v945_v40 }
 0x307   : > { %v990_v3 = vadd.f32 %v974_v43, %v958_v54  ;;  %v991_v4 = vadd.f32 %v975_v44, %v959_v55  ;;  %v992_v5 = vadd.f32 %v976_v47, %v960_v57  ;;  %v993_v6 = vadd.f32 %v977_v37, %v961_v58 }
 0x308   : > { %v994_v51 = vadd.f32 %v978_v48, %v962_v63  ;;  %v995_v7 = vadd.f32 %v979_v60, %v963_v1  ;;  %v996_v8 = vadd.f32 %v980_v62, %v964_v2  ;;  %v997_v9 = vadd.f32 %v981_v56, %v965_v61 }
 0x309   : > { %v1006_v11 = vmax.f32 %v990_v3, 0.0  ;;  %v1007_v12 = vmax.f32 %v991_v4, 0.0  ;;  %v1008_v59 = vmax.f32 %v992_v5, 0.0  ;;  %v1009_v13 = vmax.f32 %v993_v6, 0.0 }
 0x30a   : > { %v1010_v16 = vmax.f32 %v994_v51, 0.0  ;;  %v1011_v17 = vmax.f32 %v995_v7, 0.0  ;;  %v1012_v18 = vmax.f32 %v996_v8, 0.0  ;;  %v1013_v20 = vmax.f32 %v997_v9, 0.0 }
 0x30b   : > { %1022 = vst [vmem:[%s1905_s9] sm:$0xff] %v1006_v11  ;;  %1023 = vst [vmem:[%s1905_s9 + $0x8] sm:$0xff] %v1007_v12  ;;  %v966_v22 = vadd.f32 %v2028_v42, %v946_v41  ;;  %v967_v23 = vadd.f32 %v2028_v42, %v947_v0  ;;  %v968_v24 = vadd.f32 %v2028_v42, %v948_v45 }
 0x30c   : > { %1024 = vst [vmem:[%s1905_s9 + $0x10] sm:$0xff] %v1008_v59  ;;  %1025 = vst [vmem:[%s1905_s9 + $0x18] sm:$0xff] %v1009_v13  ;;  %v969_v25 = vadd.f32 %v2028_v42, %v949_v46  ;;  %v970_v29 = vadd.f32 %v2028_v42, %v950_v49  ;;  %v971_v30 = vadd.f32 %v2028_v42, %v951_v50 }
 0x30d   : > { %1026 = vst [vmem:[%s1905_s9 + $0x20] sm:$0xff] %v1010_v16  ;;  %1027 = vst [vmem:[%s1905_s9 + $0x28] sm:$0xff] %v1011_v17  ;;  %v972_v31 = vadd.f32 %v2028_v42, %v952_v52  ;;  %v973_v32 = vadd.f32 %v2028_v42, %v953_v53  ;;  %v998_v33 = vadd.f32 %v982_v10, %v966_v22 }
 0x30e   : > { %1028 = vst [vmem:[%s1905_s9 + $0x30] sm:$0xff] %v1012_v18  ;;  %1029 = vst [vmem:[%s1905_s9 + $0x38] sm:$0xff] %v1013_v20  ;;  %v999_v34 = vadd.f32 %v983_v14, %v967_v23  ;;  %v1000_v35 = vadd.f32 %v984_v15, %v968_v24  ;;  %v1001_v36 = vadd.f32 %v985_v19, %v969_v25 }
 0x30f   : > { %v1002_v38 = vadd.f32 %v986_v21, %v970_v29  ;;  %v1003_v39 = vadd.f32 %v987_v26, %v971_v30  ;;  %v1004_v40 = vadd.f32 %v988_v27, %v972_v31  ;;  %v1005_v41 = vadd.f32 %v989_v28, %v973_v32 }
 0x310   : > { %v1014_v43 = vmax.f32 %v998_v33, 0.0  ;;  %v1015_v44 = vmax.f32 %v999_v34, 0.0  ;;  %v1016_v0 = vmax.f32 %v1000_v35, 0.0  ;;  %v1017_v42 = vmax.f32 %v1001_v36, 0.0 }
 0x311   : > { %v1018_v45 = vmax.f32 %v1002_v38, 0.0  ;;  %v1019_v46 = vmax.f32 %v1003_v39, 0.0  ;;  %v1020_v47 = vmax.f32 %v1004_v40, 0.0  ;;  %v1021_v37 = vmax.f32 %v1005_v41, 0.0 }
 0x312   : > { %1030 = vst [vmem:[%s1905_s9 + $0x40] sm:$0xff] %v1014_v43  ;;  %1031 = vst [vmem:[%s1905_s9 + $0x48] sm:$0xff] %v1015_v44 }
 0x313   : > { %1032 = vst [vmem:[%s1905_s9 + $0x50] sm:$0xff] %v1016_v0  ;;  %1033 = vst [vmem:[%s1905_s9 + $0x58] sm:$0xff] %v1017_v42 }
 0x314   : > { %1034 = vst [vmem:[%s1905_s9 + $0x60] sm:$0xff] %v1018_v45  ;;  %1035 = vst [vmem:[%s1905_s9 + $0x68] sm:$0xff] %v1019_v46 }
 0x315   : > { %1036 = vst [vmem:[%s1905_s9 + $0x70] sm:$0xff] %v1020_v47  ;;  %1037 = vst [vmem:[%s1905_s9 + $0x78] sm:$0xff] %v1021_v37 }
 0x316 PF: > { %s1205_s23 = sshll.u32 %s1632_s18, 11  ;;  %s1052_s29 = sshll.u32 %s1905_s9, 4  ;;  %s2085_s29 = int_to_ptr.vmem [resolvable:$true] %s1052_s29 }
 0x317   : > { %s2082_s13 = scalar_lea.hbm %s2143_s4, %s1205_s23  ;;  %s1039_s28 = scalar_lea.sflag [#allocation7], %s1884_s26 }
 0x318   : > { %s1546_s25 = scalar_lea.vmem %s2085_s29, 2048  ;;  %s1658_s27 = smov [#allocation11]  }
 0x319   : > { %p1547_p7 = scmp.ne.s32.totalorder %s2085_s29, %s1546_s25  ;;  %s1550_s12 = sshll.u32 %s1658_s27, 4  ;;  %s1551_s12 = int_to_ptr.vmem [resolvable:$false] %s1550_s12 }
 0x31a   : > { %s1552_s18 = scalar_lea.vmem %s1551_s12, 4096  ;;  %p1553_p1 = scmp.lt.s32.totalorder %s2085_s29, %s1551_s12 }
 0x31b   : > { %p1548_p12 = pnand %p1547_p7, %p1828_p8  ;;  %p1554_p5 = scmp.lt.s32.totalorder %s1552_s18, %s1546_s25 }
 0x31d   : > { %p1549_p11 = pneg %p1548_p12  ;;  %p1555_p9 = por %p1554_p5, %p1553_p1 }
 0x31f   : > { %p1556_p0 = pnand %p1555_p9, %p1549_p11 }
 0x321   : > { %1559 = shalt.err (!%p1556_p0)
}
 0x322   : > { %s1560_s9 = scalar_lea.hbm %s2082_s13, 2048  ;;  %s1564_s24 = scalar_lea.hbm %s2143_s4, 4096 }
 0x323   : > { %p1561_p2 = scmp.ne.s32.totalorder %s2082_s13, %s1560_s9  ;;  %p1565_p6 = scmp.lt.u32.totalorder %s2082_s13, %s2143_s4 }
 0x324   : > { %p1566_p13 = scmp.lt.u32.totalorder %s1564_s24, %s1560_s9  ;;  %p1568_p7 = scmp.lt.u32.totalorder %s1560_s9, %s2082_s13 }
 0x325   : > { %p1562_p10 = pnand %p1561_p2, %p1828_p8 }
 0x326   : > { %p1567_p3 = por %p1566_p13, %p1565_p6 }
 0x327   : > { %p1563_p4 = pneg %p1562_p10 }
 0x328   : > { %p1569_p12 = por %p1568_p7, %p1567_p3 }
 0x32a   : > { %p1570_p11 = pnand %p1569_p12, %p1563_p4 }
 0x32c   : > { %1573 = shalt.err (!%p1570_p11)
}
 0x32d   : > { %s1659_s7 = smov 128   ;;  %s1660_s14 = smov 8  }
 0x32e   : > { %1344 = dma.vmem_to_hbm [thread:$0]  (%p1828_p8), %s2085_s29, 2048, %s2082_s13, %s1039_s28, %s1659_s7, %s1659_s7, %s1660_s14  }
 0x32f PF: > { %s2163_s25 = sld [smem:[#allocation15_spill]]  ;;  %p1366_p1 = scmp.ge.s32.totalorder %s1648_s22, 2 }
 0x330   : > { %s1067_s27 = sand.u32 1, %s1620_s15  }
 0x331   : > { %s1068_s12 = scalar_lea.sflag [#allocation7], %s1067_s27 }
 0x335   : > { %p2164_p5 = scmp.ne.s32.totalorder %s2163_s25, 0 }
 0x337   : > { %p1358_p9 = pnand %p1366_p1, %p2164_p5 }
 0x339   : > { %1615 = dma.done.wait (!%p1358_p9), %s1068_s12, 2048  }
 0x33a   : > { %1617 = vsyncadd (!%p1358_p9), %s1068_s12, 4294965248  ;;  %s21_s22 = sadd.s32 1, %s1648_s22   ;;  %s2165_s15 = smov %s1624_s16 }
 0x33b   : > { %p18_p0 = scmp.ge.s32.totalorder %s21_s22, 8   ;;  %s2166_s16 = smov %s1628_s17 }
 0x33c   : > { %s2167_s17 = smov %s1836_s30  ;;  %s2168_s18 = smov %s1640_s20 }
 0x33d   : > { %s2169_s19 = smov %s1644_s21  ;;  %s2170_s20 = smov %s2173_s10 }
 0x33e   : > { %s2171_s21 = smov %s2177_s11  ;;  %20 = sbr.rel (!%p18_p0) target bundleno = 8 (0x8), region = 109 }
 0x345   :  { %1073 = vsyncpa [#allocation6], 1 }
 0x346   :  { %1075 = vsyncpa [#allocation6 + $0x1], 1 }
 0x347   :  { %1076 = vsyncpa [#allocation9], 1 }
 0x348   :  { %1077 = vsyncpa [#allocation7], 1 }
 0x349   :  { %1079 = vsyncpa [#allocation7 + $0x1], 1 }

</bundles_post_ra>
